<compile_context>
chip_gen: v7x
topology: tpu7x:2x2x1
jax: 0.10.0
libtpu: 0.0.40
codegen_flags: <defaults>
</compile_context>

<pallas_src>
import math
import functools

import jax
import jax.numpy as jnp
from jax.experimental import pallas as pl
from jax.experimental.pallas import tpu as pltpu


# ------------------------------- tiling util -------------------------------

def _pick_tile(dim, target, align):
    """Largest tile <= target that divides `dim` and is a multiple of `align`;
    falls back to the full dim (always a legal block size)."""
    if dim <= target:
        return dim
    t = (target // align) * align
    while t >= align:
        if dim % t == 0:
            return t
        t -= align
    return dim


# --------------------------- tiled linear kernel ---------------------------

def _linear_kernel(x_ref, w_ref, o_ref, acc_ref):
    """One (tm, tn) output tile; K is the innermost ('arbitrary') grid axis."""
    @pl.when(pl.program_id(2) == 0)
    def _():
        acc_ref[...] = jnp.zeros(acc_ref.shape, acc_ref.dtype)

    # x: (tm, tk), w: (tn, tk)  ->  x @ w.T contracted on K; the nn.Linear
    # (N, K) layout is consumed as-is (no transpose pass over the weight).
    acc_ref[...] += jax.lax.dot_general(
        x_ref[...], w_ref[...],
        dimension_numbers=(((1,), (1,)), ((), ())),
        preferred_element_type=jnp.float32)

    @pl.when(pl.program_id(2) == pl.num_programs(2) - 1)
    def _():
        o_ref[...] = acc_ref[...].astype(o_ref.dtype)


def linear(x2d, w, *, tm=256, tn=256, tk=256):
    """x2d: (M, K); w: nn.Linear weight (N, K).  Returns x2d @ w.T -> (M, N)."""
    M, K = x2d.shape
    N, K2 = w.shape
    assert K == K2
    tm = _pick_tile(M, tm, 8)
    tn = _pick_tile(N, tn, 128)
    tk = _pick_tile(K, tk, 128)
    grid = (M // tm, N // tn, K // tk)
    return pl.pallas_call(
        _linear_kernel,
        out_shape=jax.ShapeDtypeStruct((M, N), x2d.dtype),
        grid=grid,
        in_specs=[pl.BlockSpec((tm, tk), lambda i, j, k: (i, k)),
                  pl.BlockSpec((tn, tk), lambda i, j, k: (j, k))],
        out_specs=pl.BlockSpec((tm, tn), lambda i, j, k: (i, j)),
        scratch_shapes=[pltpu.VMEM((tm, tn), jnp.float32)],
        compiler_params=pltpu.CompilerParams(
            dimension_semantics=("parallel", "parallel", "arbitrary")),
    )(x2d, w)


# ----------------------- flash attention (GQA + RoPE) -----------------------

def _flash_attn_kernel(q_ref, k_ref, v_ref, cos_q_ref, sin_q_ref,
                       cos_k_ref, sin_k_ref, swap_ref, o_ref,
                       qrot_ref, m_ref, l_ref, acc_ref,
                       *, scale, num_rep, head_dim):
    ki = pl.program_id(3)
    swap = swap_ref[...]                              # (D, D) signed pair-swap

    @pl.when(ki == 0)
    def _init():
        m_ref[...] = jnp.full(m_ref.shape, -jnp.inf, m_ref.dtype)
        l_ref[...] = jnp.zeros(l_ref.shape, l_ref.dtype)
        acc_ref[...] = jnp.zeros(acc_ref.shape, acc_ref.dtype)
        # RoPE the whole query group once per q block (reused across kv steps);
        # the softmax scale is folded in here.
        cq = cos_q_ref[...]
        sq = sin_q_ref[...]
        for h in range(num_rep):
            qh = q_ref[:, h * head_dim:(h + 1) * head_dim]          # (tq, D)
            q_rot = qh * cq + jnp.dot(
                qh, swap, preferred_element_type=jnp.float32) * sq
            qrot_ref[:, h * head_dim:(h + 1) * head_dim] = q_rot * scale

    # RoPE this K tile once; shared by all num_rep query heads of the group.
    k = k_ref[...]                                                  # (tkv, D)
    k_rot = k * cos_k_ref[...] + jnp.dot(
        k, swap, preferred_element_type=jnp.float32) * sin_k_ref[...]
    v = v_ref[...]                                                  # (tkv, D)

    for h in range(num_rep):
        q_rot = qrot_ref[:, h * head_dim:(h + 1) * head_dim]        # (tq, D)
        s = jax.lax.dot_general(                                    # (tq, tkv)
            q_rot, k_rot, dimension_numbers=(((1,), (1,)), ((), ())),
            preferred_element_type=jnp.float32)
        m_prev = m_ref[h]                                           # (tq, 1)
        m_new = jnp.maximum(m_prev, jnp.max(s, axis=-1, keepdims=True))
        alpha = jnp.exp(m_prev - m_new)
        p = jnp.exp(s - m_new)
        l_ref[h] = alpha * l_ref[h] + jnp.sum(p, axis=-1, keepdims=True)
        acc_ref[h] = alpha * acc_ref[h] + jnp.dot(
            p, v, preferred_element_type=jnp.float32)
        m_ref[h] = m_new

    @pl.when(ki == pl.num_programs(3) - 1)
    def _finalize():
        for h in range(num_rep):
            # approx=True in production; exact here for tight f32 parity.
            inv_l = pl.reciprocal(l_ref[h], approx=False)
            o_ref[:, h * head_dim:(h + 1) * head_dim] = (
                acc_ref[h] * inv_l).astype(o_ref.dtype)


def flash_attention(qkv2d, cos_e, sin_e, swap, *, batch, seq, n_heads,
                    n_kv_heads, head_dim, tq=128, tkv=128):
    """qkv2d: (B*S, (H + 2*Hkv) * D), columns ordered [q heads | k heads | v
    heads], each head-major.  Returns attention output as lane-dense (B*S, H*D)."""
    H, Hkv, D = n_heads, n_kv_heads, head_dim
    R = H // Hkv
    assert D % 128 == 0, "head_dim must be a multiple of 128 (TPU lane width)"
    M = batch * seq
    tq = _pick_tile(seq, tq, 8)
    tkv = _pick_tile(seq, tkv, 8)
    nq, nk = seq // tq, seq // tkv
    scale = 1.0 / math.sqrt(D)

    grid = (batch, Hkv, nq, nk)

    q_spec = pl.BlockSpec((tq, R * D), lambda b, g, qi, ki: (b * nq + qi, g))
    k_spec = pl.BlockSpec((tkv, D), lambda b, g, qi, ki: (b * nk + ki, H + g))
    v_spec = pl.BlockSpec((tkv, D),
                          lambda b, g, qi, ki: (b * nk + ki, H + Hkv + g))
    rq_spec = pl.BlockSpec((tq, D), lambda b, g, qi, ki: (qi, 0))
    rk_spec = pl.BlockSpec((tkv, D), lambda b, g, qi, ki: (ki, 0))
    sw_spec = pl.BlockSpec((D, D), lambda b, g, qi, ki: (0, 0))
    o_spec = pl.BlockSpec((tq, R * D), lambda b, g, qi, ki: (b * nq + qi, g))

    return pl.pallas_call(
        functools.partial(_flash_attn_kernel, scale=scale, num_rep=R,
                          head_dim=D),
        out_shape=jax.ShapeDtypeStruct((M, H * D), qkv2d.dtype),
        grid=grid,
        in_specs=[q_spec, k_spec, v_spec, rq_spec, rq_spec, rk_spec, rk_spec,
                  sw_spec],
        out_specs=o_spec,
        scratch_shapes=[
            pltpu.VMEM((tq, R * D), jnp.float32),   # rotated + scaled q group
            pltpu.VMEM((R, tq, 1), jnp.float32),    # running row max
            pltpu.VMEM((R, tq, 1), jnp.float32),    # running softmax denom
            pltpu.VMEM((R, tq, D), jnp.float32),    # output accumulator
        ],
        compiler_params=pltpu.CompilerParams(
            dimension_semantics=("parallel", "parallel", "parallel",
                                 "arbitrary")),
    )(qkv2d, qkv2d, qkv2d, cos_e, sin_e, cos_e, sin_e, swap)


# ------------------------------ module forward ------------------------------

def _rope_tables(freqs_cos, freqs_sin, head_dim, dtype):
    """Expanded (S, D) cos/sin tables and a signed pair-swap matrix so that
    rope(x) = x * cos_e + (x @ swap) * sin_e on interleaved (re, im) pairs."""
    cos_e = jnp.repeat(freqs_cos, 2, axis=-1).astype(dtype)         # (S, D)
    sin_e = jnp.repeat(freqs_sin, 2, axis=-1).astype(dtype)         # (S, D)
    idx = jnp.arange(head_dim)
    partner = idx + jnp.where(idx % 2 == 0, 1, -1)
    vals = jnp.where(idx % 2 == 0, 1.0, -1.0).astype(dtype)
    swap = jnp.zeros((head_dim, head_dim), dtype).at[idx, partner].set(vals)
    return cos_e, sin_e, swap


def multi_head_attention(x, freqs_cos, freqs_sin, params, *, n_heads,
                         n_kv_heads, head_dim):
    """Faithful port of MultiHeadAttention.forward (empty KV cache, no mask)."""
    B, S, dim = x.shape
    H, Hkv, D = n_heads, n_kv_heads, head_dim

    x2d = x.reshape(B * S, dim)
    # Fused QKV weight (in a real model this concat is hoisted to init time).
    w_qkv = jnp.concatenate([params["wq"], params["wk"], params["wv"]], axis=0)
    qkv2d = linear(x2d, w_qkv)                     # (B*S, (H + 2*Hkv) * D)

    cos_e, sin_e, swap = _rope_tables(freqs_cos, freqs_sin, D, x.dtype)
    attn = flash_attention(qkv2d, cos_e, sin_e, swap, batch=B, seq=S,
                           n_heads=H, n_kv_heads=Hkv, head_dim=D)  # (B*S, H*D)

    out = linear(attn, params["wo"])               # (B*S, dim)
    return out.reshape(B, S, dim)

# TODO(synk): the module's zero-length cache_k/cache_v concat is a no-op here;
# a real KV-cache append would be done with input_output_aliases on a cache
# buffer.  memory_efficient_attention() in the spec is dead code (returns
# NotImplementedError) and is not translated.


# ---------------------------- pure-JAX reference ----------------------------

def _reference(x, freqs_cos, freqs_sin, params, *, n_heads, n_kv_heads,
               head_dim):
    P = jax.lax.Precision.HIGHEST
    B, S, dim = x.shape
    R = n_heads // n_kv_heads

    def proj(w, h):
        y = jnp.einsum("bsk,nk->bsn", x, w, precision=P)
        return y.reshape(B, S, h, head_dim).transpose(0, 2, 1, 3)

    xq = proj(params["wq"], n_heads)
    xk = proj(params["wk"], n_kv_heads)
    xv = proj(params["wv"], n_kv_heads)

    def rope(t):
        x_r = t[..., 0::2]
        x_i = t[..., 1::2]
        c = freqs_cos[None, None]
        s = freqs_sin[None, None]
        o_r = x_r * c - x_i * s
        o_i = x_r * s + x_i * c
        return jnp.stack([o_r, o_i], axis=-1).reshape(t.shape)

    xq = rope(xq)
    xk = rope(xk)
    keys = jnp.repeat(xk, R, axis=1)
    vals = jnp.repeat(xv, R, axis=1)
    scores = jnp.einsum("bhqd,bhkd->bhqk", xq, keys,
                        precision=P) / math.sqrt(head_dim)
    probs = jax.nn.softmax(scores, axis=-1)
    out = jnp.einsum("bhqk,bhkd->bhqd", probs, vals, precision=P)
    out = out.transpose(0, 2, 1, 3).reshape(B, S, n_heads * head_dim)
    return jnp.einsum("bsk,nk->bsn", out, params["wo"], precision=P)


# ----------------------------------- main -----------------------------------

if __name__ == "__main__":
    # Small config consistent with the module (llama-style head_dim = 128).
    batch = 2
    seqlen = 256
    n_heads = 4
    n_kv_heads = 2          # GQA: num_repeat = 2
    head_dim = 128
    dim = n_heads * head_dim  # 512

    key = jax.random.PRNGKey(0)
    kx, kq, kk, kv, ko = jax.random.split(key, 5)

    x = jax.random.normal(kx, (batch, seqlen, dim), dtype=jnp.float32)

    # nn.Linear-style weights (out_features, in_features), deterministic init.
    params = {
        "wq": jax.random.normal(kq, (n_heads * head_dim, dim), jnp.float32) * 0.02,
        "wk": jax.random.normal(kk, (n_kv_heads * head_dim, dim), jnp.float32) * 0.02,
        "wv": jax.random.normal(kv, (n_kv_heads * head_dim, dim), jnp.float32) * 0.02,
        "wo": jax.random.normal(ko, (dim, n_heads * head_dim), jnp.float32) * 0.02,
    }

    # Standard llama rotary tables: (seqlen, head_dim // 2)
    inv_freq = 1.0 / (10000.0 ** (jnp.arange(0, head_dim, 2, dtype=jnp.float32)
                                  / head_dim))
    t = jnp.arange(seqlen, dtype=jnp.float32)
    angles = jnp.outer(t, inv_freq)
    freqs_cos = jnp.cos(angles)
    freqs_sin = jnp.sin(angles)

    out = multi_head_attention(x, freqs_cos, freqs_sin, params,
                               n_heads=n_heads, n_kv_heads=n_kv_heads,
                               head_dim=head_dim)
    out = jax.block_until_ready(out)

    ref = _reference(x, freqs_cos, freqs_sin, params, n_heads=n_heads,
                     n_kv_heads=n_kv_heads, head_dim=head_dim)

    assert out.shape == (batch, seqlen, dim)
    err = float(jnp.max(jnp.abs(out - ref)))
    assert jnp.allclose(out, ref, atol=2e-3, rtol=2e-3), err
    print("KERNEL_OK")
</pallas_src>

<mosaic_0001>
module attributes {stable_mosaic.version = 11 : i64} {
  func.func @_linear_kernel(%arg0: i32, %arg1: i32, %arg2: i32, %arg3: memref<256x256xf32, #tpu.memory_space<vmem>>, %arg4: memref<256x256xf32, #tpu.memory_space<vmem>>, %arg5: memref<256x256xf32, #tpu.memory_space<vmem>>, %arg6: memref<256x256xf32, #tpu.memory_space<vmem>>) attributes {dimension_semantics = [#tpu.dimension_semantics<parallel>, #tpu.dimension_semantics<parallel>, #tpu.dimension_semantics<arbitrary>], iteration_bounds = array<i64: 2, 4, 2>, scalar_prefetch = 0 : i64, scratch_operands = 1 : i64, tpu.core_type = #tpu.core_type<tc>, window_params = [{transform_indices = @transform_0, window_bounds = array<i64: 256, 256>}, {transform_indices = @transform_1, window_bounds = array<i64: 256, 256>}, {transform_indices = @transform_2, window_bounds = array<i64: 256, 256>}]} {
    %c0_i32 = arith.constant 0 : i32
    %0 = arith.cmpi eq, %arg2, %c0_i32 : i32
    %1 = arith.extui %0 : i1 to i32
    %c0_i32_0 = arith.constant 0 : i32
    %2 = arith.cmpi ne, %1, %c0_i32_0 : i32
    scf.if %2 {
      %cst_9 = arith.constant 0.000000e+00 : f32
      %12 = vector.broadcast %cst_9 : f32 to vector<256x256xf32>
      %c0_10 = arith.constant 0 : index
      %c0_11 = arith.constant 0 : index
      %13 = vector.load %arg6[%c0_10, %c0_11] : memref<256x256xf32, #tpu.memory_space<vmem>>, vector<256x256xf32>
      tpu.vector_store %arg6[%c0_10, %c0_11], %12 {strides = array<i32>} : memref<256x256xf32, #tpu.memory_space<vmem>>, vector<256x256xf32>,
    } else {
    }
    %c0 = arith.constant 0 : index
    %c0_1 = arith.constant 0 : index
    %3 = vector.load %arg6[%c0, %c0_1] : memref<256x256xf32, #tpu.memory_space<vmem>>, vector<256x256xf32>
    %c0_2 = arith.constant 0 : index
    %c0_3 = arith.constant 0 : index
    %4 = vector.load %arg3[%c0_2, %c0_3] : memref<256x256xf32, #tpu.memory_space<vmem>>, vector<256x256xf32>
    %c0_4 = arith.constant 0 : index
    %c0_5 = arith.constant 0 : index
    %5 = vector.load %arg4[%c0_4, %c0_5] : memref<256x256xf32, #tpu.memory_space<vmem>>, vector<256x256xf32>
    %cst = arith.constant dense<0.000000e+00> : vector<256x256xf32>
    %6 = tpu.matmul %4, %5, %cst {dimension_numbers = #tpu.dot_dimension_numbers<[1], [1], [0], [0], [0, 0, 1, 0], [], []>} : vector<256x256xf32>, vector<256x256xf32>, vector<256x256xf32> -> vector<256x256xf32>
    %7 = arith.addf %3, %6 : vector<256x256xf32>
    %c0_6 = arith.constant 0 : index
    %c0_7 = arith.constant 0 : index
    %8 = vector.load %arg6[%c0_6, %c0_7] : memref<256x256xf32, #tpu.memory_space<vmem>>, vector<256x256xf32>
    tpu.vector_store %arg6[%c0_6, %c0_7], %7 {strides = array<i32>} : memref<256x256xf32, #tpu.memory_space<vmem>>, vector<256x256xf32>,
    %c1_i32 = arith.constant 1 : i32
    %9 = arith.cmpi eq, %arg2, %c1_i32 : i32
    %10 = arith.extui %9 : i1 to i32
    %c0_i32_8 = arith.constant 0 : i32
    %11 = arith.cmpi ne, %10, %c0_i32_8 : i32
    scf.if %11 {
      %c0_9 = arith.constant 0 : index
      %c0_10 = arith.constant 0 : index
      %12 = vector.load %arg6[%c0_9, %c0_10] : memref<256x256xf32, #tpu.memory_space<vmem>>, vector<256x256xf32>
      %c0_11 = arith.constant 0 : index
      %c0_12 = arith.constant 0 : index
      %13 = vector.load %arg5[%c0_11, %c0_12] : memref<256x256xf32, #tpu.memory_space<vmem>>, vector<256x256xf32>
      tpu.vector_store %arg5[%c0_11, %c0_12], %12 {strides = array<i32>} : memref<256x256xf32, #tpu.memory_space<vmem>>, vector<256x256xf32>,
    } else {
    }
    return
  }
  func.func @transform_0(%arg0: i32, %arg1: i32, %arg2: i32) -> (i32, i32) {
    %c0_i32 = arith.constant 0 : i32
    return %arg0, %arg2 : i32, i32
  }
  func.func @transform_1(%arg0: i32, %arg1: i32, %arg2: i32) -> (i32, i32) {
    %c0_i32 = arith.constant 0 : i32
    return %arg1, %arg2 : i32, i32
  }
  func.func @transform_2(%arg0: i32, %arg1: i32, %arg2: i32) -> (i32, i32) {
    %c0_i32 = arith.constant 0 : i32
    return %arg0, %arg1 : i32, i32
  }
}

</mosaic_0001>

<bundles_post_ra>
// kernel: tpu_custom_call.1
= control target key start
LH: loop header
LB: loop body
LE: loop exit
PB: predicated region body
PF: predicated region fallthrough
CT: control target
= control target key end

     0   :  { %s2350_s0 = inlined_call_operand.hbm [shape: f32[512,512], index: 0, kind: input, shape index: {}]   ;;  %s2351_s1 = inlined_call_operand.hbm [shape: f32[1024,512], index: 1, kind: input, shape index: {}]   ;;  %s2352_s2 = inlined_call_operand.hbm [shape: f32[512,1024], index: 2, kind: output, shape index: {}]  }
   0x1   :  { %2370 = sst [smem:[#allocation20_spill]] %s2350_s0 }
   0x2   :  { %2371 = sst [smem:[#allocation21_spill]] %s2351_s1 }
   0x3   :  { %2372 = sst [smem:[#allocation22_spill]] %s2352_s2 }
   0x4   :  { %7 = vsyncpa [#allocation4], 0 }
   0x5   :  { %9 = vsyncpa [#allocation4 + $0x1], 0 }
   0x6   :  { %10 = vsyncpa [#allocation7], 0 }
   0x7   :  { %12 = vsyncpa [#allocation7 + $0x1], 0 }
   0x8   :  { %13 = vsyncpa [#allocation5], 0 }
   0x9   :  { %15 = vsyncpa [#allocation5 + $0x1], 0  ;;  %s1688_s9 = smov 0   ;;  %s1690_s10 = smov 0  }
   0xa   :  { %s1692_s11 = smov 0   ;;  %s1694_s12 = smov 0  }
   0xb   :  { %s1696_s13 = smov 0   ;;  %s1698_s14 = smov 0  }
   0xc   :  { %s1700_s15 = smov 0   ;;  %s1702_s16 = smov 0  }
   0xd   :  { %s1704_s17 = smov 0   ;;  %s1706_s18 = smov 0  }
   0xe   :  { %s1708_s19 = smov 0   ;;  %s1710_s20 = smov 0  }
   0xf   :  { %s1712_s21 = smov 0   ;;  %s1714_s22 = smov 0  }
  0x10   :  { %s1716_s23 = smov 0   ;;  %s1718_s24 = smov 0  }
  0x11 LB: > { %2373 = sst [smem:[#allocation12_spill]] %s1637_s18  ;;  %s1155_s25 = sadd.s32 4294967295, %s1661_s24   ;;  %s1661_s24 = sphi %s1718_s24, %s21_s24   ;;  %s1657_s23 = sphi %s1716_s23, %s2422_s23   ;;  %s1653_s22 = sphi %s1714_s22, %s2435_s22   ;;  %s1649_s21 = sphi %s1712_s21, %s2434_s21   ;;  %s1645_s20 = sphi %s1710_s20, %s2419_s20   ;;  %s1641_s19 = sphi %s1708_s19, %s2433_s19   ;;  %s1637_s18 = sphi %s1706_s18, %s2432_s18   ;;  %s1633_s17 = sphi %s1704_s17, %s2431_s17   ;;  %s1629_s16 = sphi %s1702_s16, %s2430_s16   ;;  %s1625_s15 = sphi %s1700_s15, %s2429_s15   ;;  %s1621_s14 = sphi %s1698_s14, %s2428_s14   ;;  %s1617_s13 = sphi %s1696_s13, %s2427_s13   ;;  %s1613_s12 = sphi %s1694_s12, %s2426_s12   ;;  %s1609_s11 = sphi %s1692_s11, %s2425_s11   ;;  %s1605_s10 = sphi %s1690_s10, %s2424_s10   ;;  %s1601_s9 = sphi %s1688_s9, %s2423_s9  }
  0x12   : > { %2374 = sst [smem:[#allocation13_spill]] %s1641_s19  ;;  %s33_s26 = sadd.s32 1, %s1649_s21 }
  0x13   : > { %2375 = sst [smem:[#allocation14_spill]] %s1645_s20  ;;  %p1768_p0 = scmp.ge.s32.totalorder %s33_s26, 2 }
  0x14   : > { %2376 = sst [smem:[#allocation15_spill]] %s1657_s23  ;;  %p56_p1 = scmp.ne.s32.totalorder %s1633_s17, %s1629_s16 }
  0x15   : > { %s2437_s26 = smov (%p1768_p0, %s33_s26), 0  ;;  %p2358_p2 = scmp.eq.s32.totalorder %s1661_s24, 0 }
  0x16   : > { %2378 = sst [smem:[#allocation16_spill]] %s2437_s26  ;;  %p62_p3 = scmp.ne.s32.totalorder %s1629_s16, %s1625_s15 }
  0x17   : > { %s1784_s30 = ssub.s32 %s1649_s21, %s2437_s26  ;;  %p1786_p4 = scmp.eq.s32.totalorder %s1155_s25, 0 }
  0x18   : > { %p1792_p5 = por %p2358_p2, %p56_p1  ;;  %p1796_p6 = scmp.eq.s32.totalorder %s1155_s25, 15 }
  0x19   : > { %s2379_s3 = scalar_select %p1786_p4, 1, 0 }
  0x1a   : > { %s2381_s5 = scalar_select %p1796_p6, 1, 0 }
  0x1b   : > { %p1802_p7 = por %p1786_p4, %p62_p3  ;;  %p2357_p8 = scmp.lt.s32.totalorder %s1661_s24, 16 }
  0x1c   : > { %s142_s7 = sand.u32 1, %s1633_s17   ;;  %s2364_s15 = sshll.u32 %s1649_s21, 1 }
  0x1d   : > { %s2382_s6 = scalar_select %p1802_p7, 1, 0 }
  0x1e   : > { %s1159_s8 = sshll.u32 %s142_s7, 9  ;;  %s1182_s29 = sshll.u32 %s1657_s23, 7 }
  0x1f   : > { %2383 = sst [smem:[#allocation17_spill]] %s2382_s6  ;;  %s146_s28 = scalar_lea.vmem [#allocation3], %s1159_s8 }
  0x20   : > { %s156_s26 = sshll.u32 %s146_s28, 4  ;;  %s153_s2 = sadd.s32 %s1182_s29, %s2364_s15  ;;  %s1812_s26 = int_to_ptr.vmem [resolvable:$true] %s156_s26 }
  0x21   : > { %s1163_s25 = sshll.u32 %s153_s2, 7  ;;  %p1818_p9 = pnand %p2357_p8, %p1792_p5 }
  0x22   : > { %s2385_s0 = sld [smem:[#allocation20_spill]]  ;;  %s1828_s28 = scalar_lea.sflag [#allocation4], %s142_s7 }
  0x23   : > { %p1437_p12 = pneg %p1818_p9 }
  0x28   : > { %s1825_s6 = scalar_lea.hbm %s2385_s0, %s1163_s25  ;;  %s1440_s29 = scalar_lea.hbm %s2385_s0, 32768 }
  0x29   : > { %s1435_s2 = scalar_lea.hbm %s1825_s6, 8192  ;;  %p1441_p3 = scmp.lt.u32.totalorder %s1825_s6, %s2385_s0 }
  0x2a   : > { %p1436_p11 = scmp.ne.s32.totalorder %s1825_s6, %s1435_s2  ;;  %p1442_p5 = scmp.lt.u32.totalorder %s1440_s29, %s1435_s2 }
  0x2b   : > { %p1444_p2 = scmp.lt.u32.totalorder %s1435_s2, %s1825_s6 }
  0x2c   : > { %p1438_p13 = pnand %p1437_p12, %p1436_p11  ;;  %p1443_p8 = por %p1442_p5, %p1441_p3 }
  0x2e   : > { %p1439_p1 = pneg %p1438_p13  ;;  %p1445_p10 = por %p1444_p2, %p1443_p8 }
  0x30   : > { %p1446_p7 = pnand %p1445_p10, %p1439_p1 }
  0x32   : > { %1449 = shalt.err (!%p1446_p7)
}
  0x33   : > { %s1450_s7 = scalar_lea.vmem %s1812_s26, 8192  ;;  %s1663_s25 = smov [#allocation3]  }
  0x34   : > { %p1451_p11 = scmp.ne.s32.totalorder %s1812_s26, %s1450_s7  ;;  %s1455_s18 = sshll.u32 %s1663_s25, 4  ;;  %s1456_s18 = int_to_ptr.vmem [resolvable:$false] %s1455_s18 }
  0x35   : > { %s1457_s19 = scalar_lea.vmem %s1456_s18, 16384  ;;  %p1458_p4 = scmp.lt.s32.totalorder %s1812_s26, %s1456_s18 }
  0x36   : > { %p1453_p13 = pnand %p1451_p11, %p1437_p12  ;;  %p1459_p3 = scmp.lt.s32.totalorder %s1457_s19, %s1450_s7 }
  0x38   : > { %p1454_p6 = pneg %p1453_p13  ;;  %p1460_p5 = por %p1459_p3, %p1458_p4 }
  0x3a   : > { %p1461_p2 = pnand %p1460_p5, %p1454_p6 }
  0x3c   : > { %1464 = shalt.err (!%p1461_p2)
}
  0x3d   : > { %s2361_s2 = smov 512   ;;  %s2362_s29 = smov 256  }
  0x3e   : > { %s2363_s4 = smov 16   ;;  %p188_p4 = scmp.lt.s32.totalorder %s1661_s24, 17 }
  0x3f   : > { %1290 = dma.hbm_to_vmem [thread:$0]  (!%p1818_p9), %s1825_s6, 8192, %s1812_s26, %s1828_s28, %s2361_s2, %s2362_s29, %s2363_s4  }
  0x40   : > { %p2386_p6 = scmp.ge.s32.totalorder %s1661_s24, 1  ;;  %s1156_s7 = sadd.s32 4294967294, %s1661_s24  }
  0x41   : > { %s36_s25 = sadd.s32 1, %s1653_s22  ;;  %s77_s20 = sadd.s32 1, %s1621_s14 }
  0x42   : > { %p1862_p7 = pnand %p2386_p6, %p188_p4  ;;  %s2439_s25 = smov (!%p1768_p0, %s36_s25), %s1653_s22 }
  0x43   : > { %p84_p8 = scmp.ne.s32.totalorder %s1621_s14, %s1617_s13  ;;  %p38_p10 = scmp.ge.s32.totalorder %s2439_s25, 4 }
  0x44   : > { %p90_p9 = scmp.ne.s32.totalorder %s1617_s13, %s1613_s12  ;;  %p2388_p12 = scmp.eq.s32.totalorder %s1661_s24, 0 }
  0x45   : > { %s105_s6 = sadd.s32 1, %s1609_s11  ;;  %s2441_s25 = smov (%p38_p10, %s2439_s25), 0 }
  0x46   : > { %p1878_p1 = por %p84_p8, %p2388_p12  ;;  %2390 = sst [smem:[#allocation18_spill]] %s2441_s25 }
  0x47   : > { %s2391_s28 = sadd.s32 1, %s1657_s23  ;;  %s72_s27 = ssub.s32 %s1653_s22, %s2441_s25 }
  0x48   : > { %s2443_s28 = smov (!%p38_p10, %s2391_s28), %s1657_s23  ;;  %p2392_p0 = scmp.ne.s32.totalorder %s2379_s3, 0 }
  0x49   : > { %p42_p13 = scmp.ge.s32.totalorder %s2443_s28, 2  ;;  %s74_s12 = sor.u32 %s72_s27, %s1784_s30 }
  0x4a   : > { %p1892_p11 = por %p90_p9, %p2392_p0  ;;  %p75_p3 = scmp.eq.s32.totalorder %s74_s12, 0 }
  0x4b   : > { %p115_p5 = scmp.ne.s32.totalorder %s1609_s11, %s1605_s10  ;;  %s2445_s28 = smov (%p42_p13, %s2443_s28), 0 }
  0x4c   : > { %s2393_s18 = scalar_select %p1892_p11, 1, 0 }
  0x4d   : > { %2394 = sst [smem:[#allocation19_spill]] %s2445_s28  ;;  %s44_s3 = ssub.s32 %s1657_s23, %s2445_s28 }
  0x4e   : > { %s1902_s19 = scalar_select %p75_p3, %s1621_s14, %s77_s20  }
  0x4f   : > { %p2395_p2 = scmp.ne.s32.totalorder %s2381_s5, 0  ;;  %s46_s29 = sor.u32 %s1784_s30, %s44_s3 }
  0x50   : > { %s102_s4 = sor.u32 %s72_s27, %s44_s3  ;;  %p47_p6 = scmp.eq.s32.totalorder %s46_s29, 0 }
  0x51   : > { %p1908_p4 = por %p2395_p2, %p115_p5  ;;  %p103_p8 = scmp.eq.s32.totalorder %s102_s4, 0 }
  0x52   : > { %p121_p10 = scmp.ne.s32.totalorder %s1605_s10, %s1601_s9  ;;  %p122_p9 = scmp.eq.s32.totalorder %s1156_s7, 15 }
  0x53   : > { %s2396_s2 = scalar_select %p1908_p4, 1, 0 }
  0x54   : > { %s2397_s12 = sadd.s32 1, %s1633_s17  ;;  %p1923_p12 = por %p122_p9, %p121_p10 }
  0x55   : > { %s1918_s15 = scalar_select %p47_p6, %s1633_s17, %s2397_s12  }
  0x56   : > { %s1921_s0 = scalar_select %p103_p8, %s1609_s11, %s105_s6  }
  0x57   : > { %s2398_s20 = scalar_select %p1923_p12, 1, 0 }
  0x58   : > { %s166_s5 = sand.u32 1, %s1621_s14   ;;  %s1183_s25 = sshll.u32 %s1653_s22, 7 }
  0x59   : > { %s1164_s28 = sshll.u32 %s166_s5, 9  ;;  %s2399_s30 = sshll.u32 %s1649_s21, 1 }
  0x5a   : > { %s177_s27 = sadd.s32 %s1183_s25, %s2399_s30  ;;  %s170_s29 = scalar_lea.vmem [#allocation6], %s1164_s28 }
  0x5b   : > { %s180_s3 = sshll.u32 %s170_s29, 4  ;;  %s1168_s23 = sshll.u32 %s177_s27, 7  ;;  %s1931_s3 = int_to_ptr.vmem [resolvable:$true] %s180_s3 }
  0x5c   : > { %s2400_s1 = sld [smem:[#allocation21_spill]]  ;;  %p2401_p0 = scmp.lt.s32.totalorder %s1661_s24, 16 }
  0x5d   : > { %s1946_s25 = scalar_lea.sflag [#allocation7], %s166_s5 }
  0x5e   : > { %p1942_p13 = pnand %p2401_p0, %p1878_p1 }
  0x60   : > { %p1467_p5 = pneg %p1942_p13 }
  0x62   : > { %s1936_s12 = scalar_lea.hbm %s2400_s1, %s1168_s23  ;;  %s1470_s30 = scalar_lea.hbm %s2400_s1, 65536 }
  0x63   : > { %s1465_s28 = scalar_lea.hbm %s1936_s12, 8192  ;;  %p1471_p1 = scmp.lt.u32.totalorder %s1936_s12, %s2400_s1 }
  0x64   : > { %p1466_p3 = scmp.ne.s32.totalorder %s1936_s12, %s1465_s28  ;;  %p1472_p8 = scmp.lt.u32.totalorder %s1470_s30, %s1465_s28 }
  0x65   : > { %p1474_p9 = scmp.lt.u32.totalorder %s1465_s28, %s1936_s12 }
  0x66   : > { %p1468_p2 = pnand %p1467_p5, %p1466_p3  ;;  %p1473_p10 = por %p1472_p8, %p1471_p1 }
  0x68   : > { %p1469_p6 = pneg %p1468_p2  ;;  %p1475_p0 = por %p1474_p9, %p1473_p10 }
  0x6a   : > { %p1476_p12 = pnand %p1475_p0, %p1469_p6 }
  0x6c   : > { %1479 = shalt.err (!%p1476_p12)
}
  0x6d   : > { %s1480_s5 = scalar_lea.vmem %s1931_s3, 8192  ;;  %s1667_s4 = smov [#allocation6]  }
  0x6e   : > { %p1481_p3 = scmp.ne.s32.totalorder %s1931_s3, %s1480_s5  ;;  %s1485_s7 = sshll.u32 %s1667_s4, 4  ;;  %s1486_s7 = int_to_ptr.vmem [resolvable:$false] %s1485_s7 }
  0x6f   : > { %s1487_s23 = scalar_lea.vmem %s1486_s7, 16384  ;;  %p1488_p11 = scmp.lt.s32.totalorder %s1931_s3, %s1486_s7 }
  0x70   : > { %p1483_p2 = pnand %p1481_p3, %p1467_p5  ;;  %p1489_p1 = scmp.lt.s32.totalorder %s1487_s23, %s1480_s5 }
  0x72   : > { %p1484_p4 = pneg %p1483_p2  ;;  %p1490_p8 = por %p1489_p1, %p1488_p11 }
  0x74   : > { %p1491_p10 = pnand %p1490_p8, %p1484_p4 }
  0x76   : > { %1494 = shalt.err (!%p1491_p10)
}
  0x77   : > { %s2403_s28 = smov 16   ;;  %s2404_s26 = smov 256  }
  0x78   : > { %s2405_s30 = smov 512   ;;  %192 = sbr.rel (%p1862_p7) target bundleno = 636 (0x27c), region = 28 }
  0x79   : > { %1293 = dma.hbm_to_vmem [thread:$0]  (!%p1942_p13), %s1936_s12, 8192, %s1931_s3, %s1946_s25, %s2405_s30, %s2404_s26, %s2403_s28  }
  0x7a   : > { %s2406_s27 = sld [smem:[#allocation17_spill]] (!%p1862_p7)  ;;  %s194_s29 = sand.u32 (!%p1862_p7), 1, %s1629_s16  }
  0x7b   : > { %s1170_s4 = sshll.u32 (!%p1862_p7), %s194_s29, 9  ;;  %s195_s5 = scalar_lea.sflag (!%p1862_p7), [#allocation4], %s194_s29 }
  0x7c   : > { %s1980_s7 = scalar_lea.vmem (!%p1862_p7), [#allocation3], %s1170_s4 }
  0x80   : > { %p2407_p11 = scmp.ne.s32.totalorder %s2406_s27, 0 }
  0x82   : > { %1588 = dma.done.wait (%p2407_p11), %s195_s5, 8192  }
  0x83   : > { %1590 = vsyncadd (%p2407_p11), %s195_s5, 4294959104  ;;  %s203_s6 = sand.u32 1, %s1617_s13   ;;  %p2408_p7 = scmp.ne.s32.totalorder %s2393_s18, 0 }
  0x84   : > { %s1171_s23 = sshll.u32 %s203_s6, 9  ;;  %s204_s3 = scalar_lea.sflag [#allocation7], %s203_s6 }
  0x85   : > { %s1987_s12 = scalar_lea.vmem [#allocation6], %s1171_s23 }
  0x86   : > { %1592 = dma.done.wait (%p2408_p7), %s204_s3, 8192  }
  0x87   : > { %1594 = vsyncadd (%p2408_p7), %s204_s3, 4294959104  ;;  %s230_s8 = sand.u32 1, %s1605_s10   ;;  %s2409_s26 = sld [smem:[#allocation12_spill]] }
  0x88   : > { %s1172_s25 = sshll.u32 %s230_s8, 9 }
  0x89   : > { %s1996_s28 = scalar_lea.vmem [#allocation8], %s1172_s25 }
  0x8d   : > { %p1173_p4 = scmp.ne.s32.totalorder %s2409_s26, 0 }
  0x8e   : > { %v1668_v0 = vmov (!%p1173_p4), 0.0  }
  0x8f   : > { %242 = sbr.rel (%p1173_p4) target bundleno = 175 (0xaf), region = 40  ;;  %243 = vst [vmem:[#allocation2] sm:$0xff] (!%p1173_p4), %v1668_v0  ;;  %244 = vst [vmem:[#allocation2 + $0x8] sm:$0xff] (!%p1173_p4), %v1668_v0 }
  0x90   : > { %245 = vst [vmem:[#allocation2 + $0x10] sm:$0xff] (!%p1173_p4), %v1668_v0  ;;  %246 = vst [vmem:[#allocation2 + $0x18] sm:$0xff] (!%p1173_p4), %v1668_v0 }
  0x91   : > { %247 = vst [vmem:[#allocation2 + $0x20] sm:$0xff] (!%p1173_p4), %v1668_v0  ;;  %248 = vst [vmem:[#allocation2 + $0x28] sm:$0xff] (!%p1173_p4), %v1668_v0 }
  0x92   : > { %249 = vst [vmem:[#allocation2 + $0x30] sm:$0xff] (!%p1173_p4), %v1668_v0  ;;  %250 = vst [vmem:[#allocation2 + $0x38] sm:$0xff] (!%p1173_p4), %v1668_v0 }
  0x93   : > { %251 = vst [vmem:[#allocation2 + $0x40] sm:$0xff] (!%p1173_p4), %v1668_v0  ;;  %252 = vst [vmem:[#allocation2 + $0x48] sm:$0xff] (!%p1173_p4), %v1668_v0 }
  0x94   : > { %253 = vst [vmem:[#allocation2 + $0x50] sm:$0xff] (!%p1173_p4), %v1668_v0  ;;  %254 = vst [vmem:[#allocation2 + $0x58] sm:$0xff] (!%p1173_p4), %v1668_v0 }
  0x95   : > { %255 = vst [vmem:[#allocation2 + $0x60] sm:$0xff] (!%p1173_p4), %v1668_v0  ;;  %256 = vst [vmem:[#allocation2 + $0x68] sm:$0xff] (!%p1173_p4), %v1668_v0 }
  0x96   : > { %257 = vst [vmem:[#allocation2 + $0x70] sm:$0xff] %v1668_v0  ;;  %258 = vst [vmem:[#allocation2 + $0x78] sm:$0xff] %v1668_v0 }
  0x97   : > { %259 = vst [vmem:[#allocation2 + $0x80] sm:$0xff] %v1668_v0  ;;  %260 = vst [vmem:[#allocation2 + $0x88] sm:$0xff] %v1668_v0 }
  0x98   : > { %261 = vst [vmem:[#allocation2 + $0x90] sm:$0xff] %v1668_v0  ;;  %262 = vst [vmem:[#allocation2 + $0x98] sm:$0xff] %v1668_v0 }
  0x99   : > { %263 = vst [vmem:[#allocation2 + $0xa0] sm:$0xff] %v1668_v0  ;;  %264 = vst [vmem:[#allocation2 + $0xa8] sm:$0xff] %v1668_v0 }
  0x9a   : > { %265 = vst [vmem:[#allocation2 + $0xb0] sm:$0xff] %v1668_v0  ;;  %266 = vst [vmem:[#allocation2 + $0xb8] sm:$0xff] %v1668_v0 }
  0x9b   : > { %267 = vst [vmem:[#allocation2 + $0xc0] sm:$0xff] %v1668_v0  ;;  %268 = vst [vmem:[#allocation2 + $0xc8] sm:$0xff] %v1668_v0 }
  0x9c   : > { %269 = vst [vmem:[#allocation2 + $0xd0] sm:$0xff] %v1668_v0  ;;  %270 = vst [vmem:[#allocation2 + $0xd8] sm:$0xff] %v1668_v0 }
  0x9d   : > { %271 = vst [vmem:[#allocation2 + $0xe0] sm:$0xff] %v1668_v0  ;;  %272 = vst [vmem:[#allocation2 + $0xe8] sm:$0xff] %v1668_v0 }
  0x9e   : > { %273 = vst [vmem:[#allocation2 + $0xf0] sm:$0xff] %v1668_v0  ;;  %274 = vst [vmem:[#allocation2 + $0xf8] sm:$0xff] %v1668_v0 }
  0x9f   : > { %275 = vst [vmem:[#allocation2 + $0x100] sm:$0xff] %v1668_v0  ;;  %276 = vst [vmem:[#allocation2 + $0x108] sm:$0xff] %v1668_v0 }
  0xa0   : > { %277 = vst [vmem:[#allocation2 + $0x110] sm:$0xff] %v1668_v0  ;;  %278 = vst [vmem:[#allocation2 + $0x118] sm:$0xff] %v1668_v0 }
  0xa1   : > { %279 = vst [vmem:[#allocation2 + $0x120] sm:$0xff] %v1668_v0  ;;  %280 = vst [vmem:[#allocation2 + $0x128] sm:$0xff] %v1668_v0 }
  0xa2   : > { %281 = vst [vmem:[#allocation2 + $0x130] sm:$0xff] %v1668_v0  ;;  %282 = vst [vmem:[#allocation2 + $0x138] sm:$0xff] %v1668_v0 }
  0xa3   : > { %283 = vst [vmem:[#allocation2 + $0x140] sm:$0xff] %v1668_v0  ;;  %284 = vst [vmem:[#allocation2 + $0x148] sm:$0xff] %v1668_v0 }
  0xa4   : > { %285 = vst [vmem:[#allocation2 + $0x150] sm:$0xff] %v1668_v0  ;;  %286 = vst [vmem:[#allocation2 + $0x158] sm:$0xff] %v1668_v0 }
  0xa5   : > { %287 = vst [vmem:[#allocation2 + $0x160] sm:$0xff] %v1668_v0  ;;  %288 = vst [vmem:[#allocation2 + $0x168] sm:$0xff] %v1668_v0 }
  0xa6   : > { %289 = vst [vmem:[#allocation2 + $0x170] sm:$0xff] %v1668_v0  ;;  %290 = vst [vmem:[#allocation2 + $0x178] sm:$0xff] %v1668_v0 }
  0xa7   : > { %291 = vst [vmem:[#allocation2 + $0x180] sm:$0xff] %v1668_v0  ;;  %292 = vst [vmem:[#allocation2 + $0x188] sm:$0xff] %v1668_v0 }
  0xa8   : > { %293 = vst [vmem:[#allocation2 + $0x190] sm:$0xff] %v1668_v0  ;;  %294 = vst [vmem:[#allocation2 + $0x198] sm:$0xff] %v1668_v0 }
  0xa9   : > { %295 = vst [vmem:[#allocation2 + $0x1a0] sm:$0xff] %v1668_v0  ;;  %296 = vst [vmem:[#allocation2 + $0x1a8] sm:$0xff] %v1668_v0 }
  0xaa   : > { %297 = vst [vmem:[#allocation2 + $0x1b0] sm:$0xff] %v1668_v0  ;;  %298 = vst [vmem:[#allocation2 + $0x1b8] sm:$0xff] %v1668_v0 }
  0xab   : > { %299 = vst [vmem:[#allocation2 + $0x1c0] sm:$0xff] %v1668_v0  ;;  %300 = vst [vmem:[#allocation2 + $0x1c8] sm:$0xff] %v1668_v0 }
  0xac   : > { %301 = vst [vmem:[#allocation2 + $0x1d0] sm:$0xff] %v1668_v0  ;;  %302 = vst [vmem:[#allocation2 + $0x1d8] sm:$0xff] %v1668_v0 }
  0xad   : > { %303 = vst [vmem:[#allocation2 + $0x1e0] sm:$0xff] %v1668_v0  ;;  %304 = vst [vmem:[#allocation2 + $0x1e8] sm:$0xff] %v1668_v0 }
  0xae   : > { %305 = vst [vmem:[#allocation2 + $0x1f0] sm:$0xff] %v1668_v0  ;;  %306 = vst [vmem:[#allocation2 + $0x1f8] sm:$0xff] %v1668_v0 }
  0xaf PF: > { %v436_v1 = vld [vmem:[%s1987_s12 + $0x8] sm:$0xff]  ;;  %v438_v2 = vld [vmem:[%s1987_s12 + $0x18] sm:$0xff]  ;;  %v435_v3 = vld [vmem:[%s1987_s12] sm:$0xff]  ;;  %s2410_s18 = sld [smem:[#allocation12_spill]] }
  0xb0   : > { %v1185_v4 = vpack.c.bf16 %v438_v2, %v436_v1  ;;  %v437_v5 = vld [vmem:[%s1987_s12 + $0x10] sm:$0xff]  ;;  %v440_v6 = vld [vmem:[%s1987_s12 + $0x28] sm:$0xff]  ;;  %v442_v7 = vld [vmem:[%s1987_s12 + $0x38] sm:$0xff] }
  0xb1   : > { %v1187_v8 = vpack.c.bf16 %v437_v5, %v435_v3  ;;  %v1189_v9 = vpack.c.bf16 %v442_v7, %v440_v6  ;;  %v439_v10 = vld [vmem:[%s1987_s12 + $0x20] sm:$0xff]  ;;  %v441_v11 = vld [vmem:[%s1987_s12 + $0x30] sm:$0xff]  ;;  %v444_v12 = vld [vmem:[%s1987_s12 + $0x48] sm:$0xff] }
  0xb2   : > { %1186 = vmatprep.subr.bf16.mxu0 %v1185_v4  ;;  %1249 = vmatprep.subr.bf16.mxu1 %v1185_v4  ;;  %v446_v13 = vld [vmem:[%s1987_s12 + $0x58] sm:$0xff]  ;;  %v1191_v14 = vpack.c.bf16 %v441_v11, %v439_v10  ;;  %v443_v16 = vld [vmem:[%s1987_s12 + $0x40] sm:$0xff]  ;;  %v445_v17 = vld [vmem:[%s1987_s12 + $0x50] sm:$0xff] }
  0xb3   : > { %1188 = vmatpush1.bf16.xpose.msra.mxu0 %v1187_v8  ;;  %1265 = vmatpush1.bf16.xpose.msra.mxu1 %v1187_v8  ;;  %v1193_v15 = vpack.c.bf16 %v446_v13, %v444_v12  ;;  %v448_v18 = vld [vmem:[%s1987_s12 + $0x68] sm:$0xff]  ;;  %v450_v19 = vld [vmem:[%s1987_s12 + $0x78] sm:$0xff]  ;;  %v1195_v20 = vpack.c.bf16 %v445_v17, %v443_v16  ;;  %v447_v22 = vld [vmem:[%s1987_s12 + $0x60] sm:$0xff] }
  0xb4   : > { %1190 = vmatprep.subr.bf16.mxu0 %v1189_v9  ;;  %1250 = vmatprep.subr.bf16.mxu1 %v1189_v9  ;;  %v1197_v21 = vpack.c.bf16 %v450_v19, %v448_v18  ;;  %v449_v23 = vld [vmem:[%s1987_s12 + $0x70] sm:$0xff]  ;;  %v372_v24 = vld [vmem:[%s1980_s7 + $0x8] sm:$0xff]  ;;  %v454_v27 = vld [vmem:[%s1987_s12 + $0x98] sm:$0xff] }
  0xb5   : > { %v404_v25 = vld [vmem:[%s1980_s7 + $0x108] sm:$0xff]  ;;  %563 = vmatprep.mubr.f32.mxu0 %v372_v24  ;;  %v1199_v28 = vpack.c.bf16 %v449_v23, %v447_v22  ;;  %v451_v30 = vld [vmem:[%s1987_s12 + $0x80] sm:$0xff]  ;;  %v453_v31 = vld [vmem:[%s1987_s12 + $0x90] sm:$0xff]  ;;  %p1174_p12 = scmp.ne.s32.totalorder %s2410_s18, 1 }
  0xb6   : > { %v452_v26 = vld [vmem:[%s1987_s12 + $0x88] sm:$0xff]  ;;  %659 = vmatprep.mubr.f32.mxu1 %v404_v25  ;;  %v458_v33 = vld [vmem:[%s1987_s12 + $0xb8] sm:$0xff]  ;;  %v1203_v34 = vpack.c.bf16 %v453_v31, %v451_v30  ;;  %v455_v36 = vld [vmem:[%s1987_s12 + $0xa0] sm:$0xff] }
  0xb7   : > { %v1201_v29 = vpack.c.bf16 %v454_v27, %v452_v26  ;;  %v456_v32 = vld [vmem:[%s1987_s12 + $0xa8] sm:$0xff]  ;;  %v457_v37 = vld [vmem:[%s1987_s12 + $0xb0] sm:$0xff]  ;;  %v462_v39 = vld [vmem:[%s1987_s12 + $0xd8] sm:$0xff] }
  0xb8   : > { %v1205_v35 = vpack.c.bf16 %v458_v33, %v456_v32  ;;  %v460_v38 = vld [vmem:[%s1987_s12 + $0xc8] sm:$0xff]  ;;  %v1207_v40 = vpack.c.bf16 %v457_v37, %v455_v36  ;;  %v459_v42 = vld [vmem:[%s1987_s12 + $0xc0] sm:$0xff]  ;;  %v461_v43 = vld [vmem:[%s1987_s12 + $0xd0] sm:$0xff] }
  0xb9   : > { %v1209_v41 = vpack.c.bf16 %v462_v39, %v460_v38  ;;  %v464_v44 = vld [vmem:[%s1987_s12 + $0xe8] sm:$0xff]  ;;  %v466_v45 = vld [vmem:[%s1987_s12 + $0xf8] sm:$0xff]  ;;  %v1211_v46 = vpack.c.bf16 %v461_v43, %v459_v42  ;;  %v463_v48 = vld [vmem:[%s1987_s12 + $0xe0] sm:$0xff] }
  0xba   : > { %v1213_v47 = vpack.c.bf16 %v466_v45, %v464_v44  ;;  %v465_v49 = vld [vmem:[%s1987_s12 + $0xf0] sm:$0xff]  ;;  %v468_v50 = vld [vmem:[%s1987_s12 + $0x108] sm:$0xff]  ;;  %v470_v51 = vld [vmem:[%s1987_s12 + $0x118] sm:$0xff] }
  0xbb   : > { %1192 = vmatpush1.bf16.xpose.msra.mxu0 %v1191_v14  ;;  %1266 = vmatpush1.bf16.xpose.msra.mxu1 %v1191_v14  ;;  %v1215_v52 = vpack.c.bf16 %v465_v49, %v463_v48  ;;  %v1217_v53 = vpack.c.bf16 %v470_v51, %v468_v50  ;;  %v467_v54 = vld [vmem:[%s1987_s12 + $0x100] sm:$0xff]  ;;  %v469_v55 = vld [vmem:[%s1987_s12 + $0x110] sm:$0xff]  ;;  %v472_v56 = vld [vmem:[%s1987_s12 + $0x128] sm:$0xff] }
  0xbc   : > { %1194 = vmatprep.subr.bf16.mxu0 %v1193_v15  ;;  %1251 = vmatprep.subr.bf16.mxu1 %v1193_v15  ;;  %v474_v57 = vld [vmem:[%s1987_s12 + $0x138] sm:$0xff]  ;;  %v1219_v58 = vpack.c.bf16 %v469_v55, %v467_v54  ;;  %v471_v60 = vld [vmem:[%s1987_s12 + $0x120] sm:$0xff]  ;;  %v473_v61 = vld [vmem:[%s1987_s12 + $0x130] sm:$0xff] }
  0xbd   : > { %v1221_v59 = vpack.c.bf16 %v474_v57, %v472_v56  ;;  %v476_v62 = vld [vmem:[%s1987_s12 + $0x148] sm:$0xff]  ;;  %v478_v63 = vld [vmem:[%s1987_s12 + $0x158] sm:$0xff]  ;;  %v1223_v0 = vpack.c.bf16 %v473_v61, %v471_v60  ;;  %v475_v2 = vld [vmem:[%s1987_s12 + $0x140] sm:$0xff] }
  0xbe   : > { %v1225_v1 = vpack.c.bf16 %v478_v63, %v476_v62  ;;  %v477_v3 = vld [vmem:[%s1987_s12 + $0x150] sm:$0xff]  ;;  %v480_v4 = vld [vmem:[%s1987_s12 + $0x168] sm:$0xff]  ;;  %v482_v5 = vld [vmem:[%s1987_s12 + $0x178] sm:$0xff] }
  0xbf   : > { %v1227_v6 = vpack.c.bf16 %v477_v3, %v475_v2  ;;  %v1229_v7 = vpack.c.bf16 %v482_v5, %v480_v4  ;;  %v479_v8 = vld [vmem:[%s1987_s12 + $0x160] sm:$0xff]  ;;  %v481_v9 = vld [vmem:[%s1987_s12 + $0x170] sm:$0xff]  ;;  %v484_v10 = vld [vmem:[%s1987_s12 + $0x188] sm:$0xff] }
  0xc0   : > { %v486_v11 = vld [vmem:[%s1987_s12 + $0x198] sm:$0xff]  ;;  %v1231_v12 = vpack.c.bf16 %v481_v9, %v479_v8  ;;  %v483_v14 = vld [vmem:[%s1987_s12 + $0x180] sm:$0xff]  ;;  %v485_v15 = vld [vmem:[%s1987_s12 + $0x190] sm:$0xff] }
  0xc1   : > { %v1233_v13 = vpack.c.bf16 %v486_v11, %v484_v10  ;;  %v488_v16 = vld [vmem:[%s1987_s12 + $0x1a8] sm:$0xff]  ;;  %v490_v17 = vld [vmem:[%s1987_s12 + $0x1b8] sm:$0xff]  ;;  %v1235_v18 = vpack.c.bf16 %v485_v15, %v483_v14  ;;  %v491_v26 = vld [vmem:[%s1987_s12 + $0x1c0] sm:$0xff] }
  0xc2   : > { %v1237_v19 = vpack.c.bf16 %v490_v17, %v488_v16  ;;  %v492_v22 = vld [vmem:[%s1987_s12 + $0x1c8] sm:$0xff]  ;;  %v494_v23 = vld [vmem:[%s1987_s12 + $0x1d8] sm:$0xff]  ;;  %v493_v27 = vld [vmem:[%s1987_s12 + $0x1d0] sm:$0xff] }
  0xc3   : > { %1196 = vmatpush1.bf16.xpose.msra.mxu0 %v1195_v20  ;;  %1267 = vmatpush1.bf16.xpose.msra.mxu1 %v1195_v20  ;;  %v487_v20 = vld [vmem:[%s1987_s12 + $0x1a0] sm:$0xff]  ;;  %v1241_v25 = vpack.c.bf16 %v494_v23, %v492_v22  ;;  %v1243_v30 = vpack.c.bf16 %v493_v27, %v491_v26  ;;  %v497_v33 = vld [vmem:[%s1987_s12 + $0x1f0] sm:$0xff]  ;;  %v374_v37 = vld [vmem:[%s1980_s7 + $0x18] sm:$0xff] }
  0xc4   : > { %1198 = vmatprep.subr.bf16.mxu0 %v1197_v21  ;;  %1252 = vmatprep.subr.bf16.mxu1 %v1197_v21  ;;  %v489_v21 = vld [vmem:[%s1987_s12 + $0x1b0] sm:$0xff]  ;;  %v495_v32 = vld [vmem:[%s1987_s12 + $0x1e0] sm:$0xff]  ;;  %v406_v38 = vld [vmem:[%s1980_s7 + $0x118] sm:$0xff] }
  0xc5   : > { %v1239_v24 = vpack.c.bf16 %v489_v21, %v487_v20  ;;  %v403_v36 = vld [vmem:[%s1980_s7 + $0x100] sm:$0xff]  ;;  %v373_v39 = vld [vmem:[%s1980_s7 + $0x10] sm:$0xff]  ;;  %v408_v42 = vld [vmem:[%s1980_s7 + $0x128] sm:$0xff] }
  0xc6   : > { %v375_v43 = vld [vmem:[%s1980_s7 + $0x20] sm:$0xff]  ;;  %v378_v45 = vld [vmem:[%s1980_s7 + $0x38] sm:$0xff]  ;;  %v409_v48 = vld [vmem:[%s1980_s7 + $0x130] sm:$0xff] }
  0xc7   : > { %v407_v44 = vld [vmem:[%s1980_s7 + $0x120] sm:$0xff]  ;;  %v380_v49 = vld [vmem:[%s1980_s7 + $0x48] sm:$0xff]  ;;  %v414_v54 = vld [vmem:[%s1980_s7 + $0x158] sm:$0xff] }
  0xc8   : > { %v412_v50 = vld [vmem:[%s1980_s7 + $0x148] sm:$0xff]  ;;  %v379_v51 = vld [vmem:[%s1980_s7 + $0x40] sm:$0xff]  ;;  %v381_v55 = vld [vmem:[%s1980_s7 + $0x50] sm:$0xff] }
  0xc9   : > { %v413_v56 = vld [vmem:[%s1980_s7 + $0x150] sm:$0xff]  ;;  %v384_v57 = vld [vmem:[%s1980_s7 + $0x68] sm:$0xff]  ;;  %v415_v60 = vld [vmem:[%s1980_s7 + $0x160] sm:$0xff] }
  0xca   : > { %v386_v61 = vld [vmem:[%s1980_s7 + $0x78] sm:$0xff]  ;;  %v385_v63 = vld [vmem:[%s1980_s7 + $0x70] sm:$0xff]  ;;  %v420_v2 = vld [vmem:[%s1980_s7 + $0x188] sm:$0xff] }
  0xcb   : > { %1200 = vmatpush1.bf16.xpose.msra.mxu0 %v1199_v28  ;;  %1268 = vmatpush1.bf16.xpose.msra.mxu1 %v1199_v28  ;;  %v496_v28 = vld [vmem:[%s1987_s12 + $0x1e8] sm:$0xff]  ;;  %v418_v62 = vld [vmem:[%s1980_s7 + $0x178] sm:$0xff]  ;;  %v387_v3 = vld [vmem:[%s1980_s7 + $0x80] sm:$0xff] }
  0xcc   : > { %1202 = vmatprep.subr.bf16.mxu0 %v1201_v29  ;;  %1253 = vmatprep.subr.bf16.mxu1 %v1201_v29  ;;  %v498_v29 = vld [vmem:[%s1987_s12 + $0x1f8] sm:$0xff]  ;;  %v419_v4 = vld [vmem:[%s1980_s7 + $0x180] sm:$0xff]  ;;  %v421_v8 = vld [vmem:[%s1980_s7 + $0x190] sm:$0xff] }
  0xcd   : > { %v1245_v31 = vpack.c.bf16 %v498_v29, %v496_v28  ;;  %v390_v5 = vld [vmem:[%s1980_s7 + $0x98] sm:$0xff]  ;;  %v392_v9 = vld [vmem:[%s1980_s7 + $0xa8] sm:$0xff]  ;;  %v391_v11 = vld [vmem:[%s1980_s7 + $0xa0] sm:$0xff] }
  0xce   : > { %v424_v10 = vld [vmem:[%s1980_s7 + $0x1a8] sm:$0xff]  ;;  %v426_v14 = vld [vmem:[%s1980_s7 + $0x1b8] sm:$0xff]  ;;  %v393_v15 = vld [vmem:[%s1980_s7 + $0xb0] sm:$0xff] }
  0xcf   : > { %v425_v16 = vld [vmem:[%s1980_s7 + $0x1b0] sm:$0xff]  ;;  %v396_v17 = vld [vmem:[%s1980_s7 + $0xc8] sm:$0xff]  ;;  %v427_v20 = vld [vmem:[%s1980_s7 + $0x1c0] sm:$0xff] }
  0xd0   : > { %v398_v21 = vld [vmem:[%s1980_s7 + $0xd8] sm:$0xff]  ;;  %v397_v23 = vld [vmem:[%s1980_s7 + $0xd0] sm:$0xff]  ;;  %v432_v26 = vld [vmem:[%s1980_s7 + $0x1e8] sm:$0xff] }
  0xd1   : > { %v430_v22 = vld [vmem:[%s1980_s7 + $0x1d8] sm:$0xff]  ;;  %v399_v27 = vld [vmem:[%s1980_s7 + $0xe0] sm:$0xff] }
  0xd2   : > { %v431_v28 = vld [vmem:[%s1980_s7 + $0x1e0] sm:$0xff]  ;;  %v402_v29 = vld [vmem:[%s1980_s7 + $0xf8] sm:$0xff] }
  0xd3   : > { %1204 = vmatpush1.bf16.xpose.msra.mxu0 %v1203_v34  ;;  %1269 = vmatpush1.bf16.xpose.msra.mxu1 %v1203_v34  ;;  %v1247_v34 = vpack.c.bf16 %v497_v33, %v495_v32  ;;  %v433_v32 = vld [vmem:[%s1980_s7 + $0x1f0] sm:$0xff]  ;;  %v307_v33 = vld [vmem:[#allocation2] sm:$0xff] }
  0xd4   : > { %1206 = vmatprep.subr.bf16.mxu0 %v1205_v35  ;;  %1254 = vmatprep.subr.bf16.mxu1 %v1205_v35  ;;  %v371_v35 = vld [vmem:[%s1980_s7] sm:$0xff] }
  0xdb   : > { %1208 = vmatpush1.bf16.xpose.msra.mxu0 %v1207_v40  ;;  %1270 = vmatpush1.bf16.xpose.msra.mxu1 %v1207_v40  ;;  %v405_v40 = vld [vmem:[%s1980_s7 + $0x110] sm:$0xff] }
  0xdc   : > { %1210 = vmatprep.subr.bf16.mxu0 %v1209_v41  ;;  %1255 = vmatprep.subr.bf16.mxu1 %v1209_v41  ;;  %v376_v41 = vld [vmem:[%s1980_s7 + $0x28] sm:$0xff] }
  0xe3   : > { %1212 = vmatpush1.bf16.xpose.msra.mxu0 %v1211_v46  ;;  %1271 = vmatpush1.bf16.xpose.msra.mxu1 %v1211_v46  ;;  %v410_v46 = vld [vmem:[%s1980_s7 + $0x138] sm:$0xff] }
  0xe4   : > { %1214 = vmatprep.subr.bf16.mxu0 %v1213_v47  ;;  %1256 = vmatprep.subr.bf16.mxu1 %v1213_v47  ;;  %v377_v47 = vld [vmem:[%s1980_s7 + $0x30] sm:$0xff] }
  0xeb   : > { %1216 = vmatpush1.bf16.xpose.msra.mxu0 %v1215_v52  ;;  %1272 = vmatpush1.bf16.xpose.msra.mxu1 %v1215_v52  ;;  %v411_v52 = vld [vmem:[%s1980_s7 + $0x140] sm:$0xff] }
  0xec   : > { %1218 = vmatprep.subr.bf16.mxu0 %v1217_v53  ;;  %1257 = vmatprep.subr.bf16.mxu1 %v1217_v53  ;;  %v382_v53 = vld [vmem:[%s1980_s7 + $0x58] sm:$0xff] }
  0xf3   : > { %1220 = vmatpush1.bf16.xpose.msra.mxu0 %v1219_v58  ;;  %1273 = vmatpush1.bf16.xpose.msra.mxu1 %v1219_v58  ;;  %v416_v58 = vld [vmem:[%s1980_s7 + $0x168] sm:$0xff] }
  0xf4   : > { %1222 = vmatprep.subr.bf16.mxu0 %v1221_v59  ;;  %1258 = vmatprep.subr.bf16.mxu1 %v1221_v59  ;;  %v383_v59 = vld [vmem:[%s1980_s7 + $0x60] sm:$0xff] }
  0xfb   : > { %1224 = vmatpush1.bf16.xpose.msra.mxu0 %v1223_v0  ;;  %1274 = vmatpush1.bf16.xpose.msra.mxu1 %v1223_v0  ;;  %v417_v0 = vld [vmem:[%s1980_s7 + $0x170] sm:$0xff] }
  0xfc   : > { %1226 = vmatprep.subr.bf16.mxu0 %v1225_v1  ;;  %1259 = vmatprep.subr.bf16.mxu1 %v1225_v1  ;;  %v388_v1 = vld [vmem:[%s1980_s7 + $0x88] sm:$0xff] }
 0x103   : > { %1228 = vmatpush1.bf16.xpose.msra.mxu0 %v1227_v6  ;;  %1275 = vmatpush1.bf16.xpose.msra.mxu1 %v1227_v6  ;;  %v422_v6 = vld [vmem:[%s1980_s7 + $0x198] sm:$0xff] }
 0x104   : > { %1230 = vmatprep.subr.bf16.mxu0 %v1229_v7  ;;  %1260 = vmatprep.subr.bf16.mxu1 %v1229_v7  ;;  %v389_v7 = vld [vmem:[%s1980_s7 + $0x90] sm:$0xff] }
 0x10b   : > { %1232 = vmatpush1.bf16.xpose.msra.mxu0 %v1231_v12  ;;  %1276 = vmatpush1.bf16.xpose.msra.mxu1 %v1231_v12  ;;  %v423_v12 = vld [vmem:[%s1980_s7 + $0x1a0] sm:$0xff] }
 0x10c   : > { %1234 = vmatprep.subr.bf16.mxu0 %v1233_v13  ;;  %1261 = vmatprep.subr.bf16.mxu1 %v1233_v13  ;;  %v394_v13 = vld [vmem:[%s1980_s7 + $0xb8] sm:$0xff] }
 0x113   : > { %1236 = vmatpush1.bf16.xpose.msra.mxu0 %v1235_v18  ;;  %1277 = vmatpush1.bf16.xpose.msra.mxu1 %v1235_v18  ;;  %v428_v18 = vld [vmem:[%s1980_s7 + $0x1c8] sm:$0xff] }
 0x114   : > { %1238 = vmatprep.subr.bf16.mxu0 %v1237_v19  ;;  %1262 = vmatprep.subr.bf16.mxu1 %v1237_v19  ;;  %v395_v19 = vld [vmem:[%s1980_s7 + $0xc0] sm:$0xff] }
 0x11b   : > { %1240 = vmatpush1.bf16.xpose.msra.mxu0 %v1239_v24  ;;  %1278 = vmatpush1.bf16.xpose.msra.mxu1 %v1239_v24  ;;  %v429_v24 = vld [vmem:[%s1980_s7 + $0x1d0] sm:$0xff] }
 0x11c   : > { %1242 = vmatprep.subr.bf16.mxu0 %v1241_v25  ;;  %1263 = vmatprep.subr.bf16.mxu1 %v1241_v25  ;;  %v400_v25 = vld [vmem:[%s1980_s7 + $0xe8] sm:$0xff] }
 0x123   : > { %1244 = vmatpush1.bf16.xpose.msra.mxu0 %v1243_v30  ;;  %1279 = vmatpush1.bf16.xpose.msra.mxu1 %v1243_v30  ;;  %v434_v30 = vld [vmem:[%s1980_s7 + $0x1f8] sm:$0xff] }
 0x124   : > { %1246 = vmatprep.subr.bf16.mxu0 %v1245_v31  ;;  %1264 = vmatprep.subr.bf16.mxu1 %v1245_v31  ;;  %v401_v31 = vld [vmem:[%s1980_s7 + $0xf0] sm:$0xff] }
 0x12b   : > { %1248 = vmatpush1.bf16.xpose.msra.mxu0 %v1247_v34  ;;  %1280 = vmatpush1.bf16.xpose.msra.mxu1 %v1247_v34  ;;  %v339_v34 = vld [vmem:[#allocation2 + $0x100] sm:$0xff] }
 0x132   : > { %564 = vmatmul.mubr.f32.vlgmr.msra.gmra.mrb[0].mxu0 %v371_v35  ;;  %660 = vmatmul.mubr.f32.vlgmr.msra.gmra.mrb[0].mxu1 %v403_v36  ;;  %v308_v35 = vld [vmem:[#allocation2 + $0x8] sm:$0xff] }
 0x133   : > { %569 = vmatprep.mubr.f32.mxu0 %v374_v37  ;;  %665 = vmatprep.mubr.f32.mxu1 %v406_v38  ;;  %v340_v36 = vld [vmem:[#allocation2 + $0x108] sm:$0xff] }
 0x136   : > { %570 = vmatmul.mubr.f32.gmra.mrb[2].mxu0 %v373_v39  ;;  %666 = vmatmul.mubr.f32.gmra.mrb[2].mxu1 %v405_v40 }
 0x137   : > { %575 = vmatprep.mubr.f32.mxu0 %v376_v41  ;;  %671 = vmatprep.mubr.f32.mxu1 %v408_v42 }
 0x13a   : > { %576 = vmatmul.mubr.f32.gmra.mrb[4].mxu0 %v375_v43  ;;  %672 = vmatmul.mubr.f32.gmra.mrb[4].mxu1 %v407_v44 }
 0x13b   : > { %581 = vmatprep.mubr.f32.mxu0 %v378_v45  ;;  %677 = vmatprep.mubr.f32.mxu1 %v410_v46  ;;  %v309_v45 = vld [vmem:[#allocation2 + $0x10] sm:$0xff] }
 0x13c   : > { %v341_v46 = vld [vmem:[#allocation2 + $0x110] sm:$0xff] }
 0x13e   : > { %582 = vmatmul.mubr.f32.gmra.mrb[6].mxu0 %v377_v47  ;;  %678 = vmatmul.mubr.f32.gmra.mrb[6].mxu1 %v409_v48  ;;  %v310_v47 = vld [vmem:[#allocation2 + $0x18] sm:$0xff] }
 0x13f   : > { %587 = vmatprep.mubr.f32.mxu0 %v380_v49  ;;  %683 = vmatprep.mubr.f32.mxu1 %v412_v50  ;;  %v342_v48 = vld [vmem:[#allocation2 + $0x118] sm:$0xff] }
 0x142   : > { %588 = vmatmul.mubr.f32.gmra.mrb[8].mxu0 %v379_v51  ;;  %684 = vmatmul.mubr.f32.gmra.mrb[8].mxu1 %v411_v52 }
 0x143   : > { %593 = vmatprep.mubr.f32.mxu0 %v382_v53  ;;  %689 = vmatprep.mubr.f32.mxu1 %v414_v54 }
 0x146   : > { %594 = vmatmul.mubr.f32.gmra.mrb[10].mxu0 %v381_v55  ;;  %690 = vmatmul.mubr.f32.gmra.mrb[10].mxu1 %v413_v56 }
 0x147   : > { %599 = vmatprep.mubr.f32.mxu0 %v384_v57  ;;  %695 = vmatprep.mubr.f32.mxu1 %v416_v58  ;;  %v311_v57 = vld [vmem:[#allocation2 + $0x20] sm:$0xff] }
 0x148   : > { %v343_v58 = vld [vmem:[#allocation2 + $0x120] sm:$0xff] }
 0x14a   : > { %600 = vmatmul.mubr.f32.gmra.mrb[12].mxu0 %v383_v59  ;;  %696 = vmatmul.mubr.f32.gmra.mrb[12].mxu1 %v415_v60  ;;  %v312_v59 = vld [vmem:[#allocation2 + $0x28] sm:$0xff] }
 0x14b   : > { %605 = vmatprep.mubr.f32.mxu0 %v386_v61  ;;  %701 = vmatprep.mubr.f32.mxu1 %v418_v62  ;;  %v344_v60 = vld [vmem:[#allocation2 + $0x128] sm:$0xff] }
 0x14e   : > { %606 = vmatmul.mubr.f32.gmra.mrb[14].mxu0 %v385_v63  ;;  %702 = vmatmul.mubr.f32.gmra.mrb[14].mxu1 %v417_v0 }
 0x14f   : > { %611 = vmatprep.mubr.f32.mxu0 %v388_v1  ;;  %707 = vmatprep.mubr.f32.mxu1 %v420_v2 }
 0x152   : > { %612 = vmatmul.mubr.f32.gmra.mrb[16].mxu0 %v387_v3  ;;  %708 = vmatmul.mubr.f32.gmra.mrb[16].mxu1 %v419_v4 }
 0x153   : > { %617 = vmatprep.mubr.f32.mxu0 %v390_v5  ;;  %713 = vmatprep.mubr.f32.mxu1 %v422_v6  ;;  %v313_v5 = vld [vmem:[#allocation2 + $0x30] sm:$0xff] }
 0x154   : > { %v345_v6 = vld [vmem:[#allocation2 + $0x130] sm:$0xff] }
 0x156   : > { %618 = vmatmul.mubr.f32.gmra.mrb[18].mxu0 %v389_v7  ;;  %714 = vmatmul.mubr.f32.gmra.mrb[18].mxu1 %v421_v8  ;;  %v314_v7 = vld [vmem:[#allocation2 + $0x38] sm:$0xff] }
 0x157   : > { %623 = vmatprep.mubr.f32.mxu0 %v392_v9  ;;  %719 = vmatprep.mubr.f32.mxu1 %v424_v10  ;;  %v346_v8 = vld [vmem:[#allocation2 + $0x138] sm:$0xff] }
 0x15a   : > { %624 = vmatmul.mubr.f32.gmra.mrb[20].mxu0 %v391_v11  ;;  %720 = vmatmul.mubr.f32.gmra.mrb[20].mxu1 %v423_v12 }
 0x15b   : > { %629 = vmatprep.mubr.f32.mxu0 %v394_v13  ;;  %725 = vmatprep.mubr.f32.mxu1 %v426_v14 }
 0x15e   : > { %630 = vmatmul.mubr.f32.gmra.mrb[22].mxu0 %v393_v15  ;;  %726 = vmatmul.mubr.f32.gmra.mrb[22].mxu1 %v425_v16 }
 0x15f   : > { %635 = vmatprep.mubr.f32.mxu0 %v396_v17  ;;  %731 = vmatprep.mubr.f32.mxu1 %v428_v18  ;;  %v315_v17 = vld [vmem:[#allocation2 + $0x40] sm:$0xff] }
 0x160   : > { %v347_v18 = vld [vmem:[#allocation2 + $0x140] sm:$0xff] }
 0x162   : > { %636 = vmatmul.mubr.f32.gmra.mrb[24].mxu0 %v395_v19  ;;  %732 = vmatmul.mubr.f32.gmra.mrb[24].mxu1 %v427_v20  ;;  %v316_v19 = vld [vmem:[#allocation2 + $0x48] sm:$0xff] }
 0x163   : > { %641 = vmatprep.mubr.f32.mxu0 %v398_v21  ;;  %737 = vmatprep.mubr.f32.mxu1 %v430_v22  ;;  %v348_v20 = vld [vmem:[#allocation2 + $0x148] sm:$0xff] }
 0x166   : > { %642 = vmatmul.mubr.f32.gmra.mrb[26].mxu0 %v397_v23  ;;  %738 = vmatmul.mubr.f32.gmra.mrb[26].mxu1 %v429_v24 }
 0x167   : > { %647 = vmatprep.mubr.f32.mxu0 %v400_v25  ;;  %743 = vmatprep.mubr.f32.mxu1 %v432_v26 }
 0x16a   : > { %648 = vmatmul.mubr.f32.gmra.mrb[28].mxu0 %v399_v27  ;;  %744 = vmatmul.mubr.f32.gmra.mrb[28].mxu1 %v431_v28 }
 0x16b   : > { %653 = vmatprep.mubr.f32.mxu0 %v402_v29  ;;  %749 = vmatprep.mubr.f32.mxu1 %v434_v30  ;;  %v317_v29 = vld [vmem:[#allocation2 + $0x50] sm:$0xff] }
 0x16c   : > { %v349_v30 = vld [vmem:[#allocation2 + $0x150] sm:$0xff] }
 0x16e   : > { %654 = vmatmul.mubr.f32.gmra.mrb[30].mxu0 %v401_v31  ;;  %750 = vmatmul.mubr.f32.gmra.mrb[30].mxu1 %v433_v32  ;;  %v318_v31 = vld [vmem:[#allocation2 + $0x58] sm:$0xff] }
 0x16f   : > { %v350_v32 = vld [vmem:[#allocation2 + $0x158] sm:$0xff] }
 0x205   : > { %v565_v37 = vpop.f32.mrb[0].mxu0  ;;  %v661_v38 = vpop.f32.mrb[0].mxu1 }
 0x206   : > { %v756_v39 = vadd.f32 %v565_v37, %v307_v33  ;;  %v788_v40 = vadd.f32 %v661_v38, %v339_v34  ;;  %v567_v41 = vpop.f32.mrb[1].mxu0  ;;  %v663_v42 = vpop.f32.mrb[1].mxu1 }
 0x207   : > { %v757_v43 = vadd.f32 %v567_v41, %v308_v35  ;;  %v789_v44 = vadd.f32 %v663_v42, %v340_v36  ;;  %v319_v41 = vld [vmem:[#allocation2 + $0x60] sm:$0xff] }
 0x208   : > { %820 = vst [vmem:[#allocation2] sm:$0xff] %v756_v39  ;;  %852 = vst [vmem:[#allocation2 + $0x100] sm:$0xff] %v788_v40  ;;  %v351_v42 = vld [vmem:[#allocation2 + $0x160] sm:$0xff] }
 0x209   : > { %821 = vst [vmem:[#allocation2 + $0x8] sm:$0xff] %v757_v43  ;;  %853 = vst [vmem:[#allocation2 + $0x108] sm:$0xff] %v789_v44  ;;  %v571_v49 = vpop.f32.mrb[2].mxu0  ;;  %v667_v50 = vpop.f32.mrb[2].mxu1  ;;  %v320_v43 = vld [vmem:[#allocation2 + $0x68] sm:$0xff] }
 0x20a   : > { %v758_v51 = vadd.f32 %v571_v49, %v309_v45  ;;  %v790_v52 = vadd.f32 %v667_v50, %v341_v46  ;;  %v573_v53 = vpop.f32.mrb[3].mxu0  ;;  %v669_v54 = vpop.f32.mrb[3].mxu1  ;;  %v352_v44 = vld [vmem:[#allocation2 + $0x168] sm:$0xff] }
 0x20b   : > { %v759_v55 = vadd.f32 %v573_v53, %v310_v47  ;;  %v791_v56 = vadd.f32 %v669_v54, %v342_v48  ;;  %v321_v53 = vld [vmem:[#allocation2 + $0x70] sm:$0xff] }
 0x20c   : > { %822 = vst [vmem:[#allocation2 + $0x10] sm:$0xff] %v758_v51  ;;  %854 = vst [vmem:[#allocation2 + $0x110] sm:$0xff] %v790_v52  ;;  %v353_v54 = vld [vmem:[#allocation2 + $0x170] sm:$0xff] }
 0x20d   : > { %823 = vst [vmem:[#allocation2 + $0x18] sm:$0xff] %v759_v55  ;;  %855 = vst [vmem:[#allocation2 + $0x118] sm:$0xff] %v791_v56  ;;  %v577_v61 = vpop.f32.mrb[4].mxu0  ;;  %v673_v62 = vpop.f32.mrb[4].mxu1  ;;  %v322_v55 = vld [vmem:[#allocation2 + $0x78] sm:$0xff] }
 0x20e   : > { %v760_v63 = vadd.f32 %v577_v61, %v311_v57  ;;  %v792_v0 = vadd.f32 %v673_v62, %v343_v58  ;;  %v579_v1 = vpop.f32.mrb[5].mxu0  ;;  %v675_v2 = vpop.f32.mrb[5].mxu1  ;;  %v354_v56 = vld [vmem:[#allocation2 + $0x178] sm:$0xff] }
 0x20f   : > { %v761_v3 = vadd.f32 %v579_v1, %v312_v59  ;;  %v793_v4 = vadd.f32 %v675_v2, %v344_v60  ;;  %v323_v1 = vld [vmem:[#allocation2 + $0x80] sm:$0xff] }
 0x210   : > { %824 = vst [vmem:[#allocation2 + $0x20] sm:$0xff] %v760_v63  ;;  %856 = vst [vmem:[#allocation2 + $0x120] sm:$0xff] %v792_v0  ;;  %v355_v2 = vld [vmem:[#allocation2 + $0x180] sm:$0xff] }
 0x211   : > { %825 = vst [vmem:[#allocation2 + $0x28] sm:$0xff] %v761_v3  ;;  %857 = vst [vmem:[#allocation2 + $0x128] sm:$0xff] %v793_v4  ;;  %v583_v9 = vpop.f32.mrb[6].mxu0  ;;  %v679_v10 = vpop.f32.mrb[6].mxu1  ;;  %v324_v3 = vld [vmem:[#allocation2 + $0x88] sm:$0xff] }
 0x212   : > { %v762_v11 = vadd.f32 %v583_v9, %v313_v5  ;;  %v794_v12 = vadd.f32 %v679_v10, %v345_v6  ;;  %v585_v13 = vpop.f32.mrb[7].mxu0  ;;  %v681_v14 = vpop.f32.mrb[7].mxu1  ;;  %v356_v4 = vld [vmem:[#allocation2 + $0x188] sm:$0xff] }
 0x213   : > { %v763_v15 = vadd.f32 %v585_v13, %v314_v7  ;;  %v795_v16 = vadd.f32 %v681_v14, %v346_v8  ;;  %v325_v13 = vld [vmem:[#allocation2 + $0x90] sm:$0xff] }
 0x214   : > { %826 = vst [vmem:[#allocation2 + $0x30] sm:$0xff] %v762_v11  ;;  %858 = vst [vmem:[#allocation2 + $0x130] sm:$0xff] %v794_v12  ;;  %v357_v14 = vld [vmem:[#allocation2 + $0x190] sm:$0xff] }
 0x215   : > { %827 = vst [vmem:[#allocation2 + $0x38] sm:$0xff] %v763_v15  ;;  %859 = vst [vmem:[#allocation2 + $0x138] sm:$0xff] %v795_v16  ;;  %v589_v21 = vpop.f32.mrb[8].mxu0  ;;  %v685_v22 = vpop.f32.mrb[8].mxu1  ;;  %v326_v15 = vld [vmem:[#allocation2 + $0x98] sm:$0xff] }
 0x216   : > { %v764_v23 = vadd.f32 %v589_v21, %v315_v17  ;;  %v796_v24 = vadd.f32 %v685_v22, %v347_v18  ;;  %v591_v25 = vpop.f32.mrb[9].mxu0  ;;  %v687_v26 = vpop.f32.mrb[9].mxu1  ;;  %v358_v16 = vld [vmem:[#allocation2 + $0x198] sm:$0xff] }
 0x217   : > { %v765_v27 = vadd.f32 %v591_v25, %v316_v19  ;;  %v797_v28 = vadd.f32 %v687_v26, %v348_v20  ;;  %v327_v25 = vld [vmem:[#allocation2 + $0xa0] sm:$0xff] }
 0x218   : > { %828 = vst [vmem:[#allocation2 + $0x40] sm:$0xff] %v764_v23  ;;  %860 = vst [vmem:[#allocation2 + $0x140] sm:$0xff] %v796_v24  ;;  %v359_v26 = vld [vmem:[#allocation2 + $0x1a0] sm:$0xff] }
 0x219   : > { %829 = vst [vmem:[#allocation2 + $0x48] sm:$0xff] %v765_v27  ;;  %861 = vst [vmem:[#allocation2 + $0x148] sm:$0xff] %v797_v28  ;;  %v595_v33 = vpop.f32.mrb[10].mxu0  ;;  %v691_v34 = vpop.f32.mrb[10].mxu1  ;;  %v328_v27 = vld [vmem:[#allocation2 + $0xa8] sm:$0xff] }
 0x21a   : > { %v766_v35 = vadd.f32 %v595_v33, %v317_v29  ;;  %v798_v36 = vadd.f32 %v691_v34, %v349_v30  ;;  %v597_v37 = vpop.f32.mrb[11].mxu0  ;;  %v693_v38 = vpop.f32.mrb[11].mxu1  ;;  %v360_v28 = vld [vmem:[#allocation2 + $0x1a8] sm:$0xff] }
 0x21b   : > { %v767_v39 = vadd.f32 %v597_v37, %v318_v31  ;;  %v799_v40 = vadd.f32 %v693_v38, %v350_v32  ;;  %v329_v37 = vld [vmem:[#allocation2 + $0xb0] sm:$0xff] }
 0x21c   : > { %830 = vst [vmem:[#allocation2 + $0x50] sm:$0xff] %v766_v35  ;;  %862 = vst [vmem:[#allocation2 + $0x150] sm:$0xff] %v798_v36  ;;  %v361_v38 = vld [vmem:[#allocation2 + $0x1b0] sm:$0xff] }
 0x21d   : > { %831 = vst [vmem:[#allocation2 + $0x58] sm:$0xff] %v767_v39  ;;  %863 = vst [vmem:[#allocation2 + $0x158] sm:$0xff] %v799_v40  ;;  %v601_v45 = vpop.f32.mrb[12].mxu0  ;;  %v697_v46 = vpop.f32.mrb[12].mxu1  ;;  %v330_v39 = vld [vmem:[#allocation2 + $0xb8] sm:$0xff] }
 0x21e   : > { %v768_v47 = vadd.f32 %v601_v45, %v319_v41  ;;  %v800_v48 = vadd.f32 %v697_v46, %v351_v42  ;;  %v603_v49 = vpop.f32.mrb[13].mxu0  ;;  %v699_v50 = vpop.f32.mrb[13].mxu1  ;;  %v362_v40 = vld [vmem:[#allocation2 + $0x1b8] sm:$0xff] }
 0x21f   : > { %v769_v51 = vadd.f32 %v603_v49, %v320_v43  ;;  %v801_v52 = vadd.f32 %v699_v50, %v352_v44  ;;  %v331_v49 = vld [vmem:[#allocation2 + $0xc0] sm:$0xff] }
 0x220   : > { %832 = vst [vmem:[#allocation2 + $0x60] sm:$0xff] %v768_v47  ;;  %864 = vst [vmem:[#allocation2 + $0x160] sm:$0xff] %v800_v48  ;;  %v363_v50 = vld [vmem:[#allocation2 + $0x1c0] sm:$0xff] }
 0x221   : > { %833 = vst [vmem:[#allocation2 + $0x68] sm:$0xff] %v769_v51  ;;  %865 = vst [vmem:[#allocation2 + $0x168] sm:$0xff] %v801_v52  ;;  %v607_v57 = vpop.f32.mrb[14].mxu0  ;;  %v703_v58 = vpop.f32.mrb[14].mxu1  ;;  %v332_v51 = vld [vmem:[#allocation2 + $0xc8] sm:$0xff] }
 0x222   : > { %v770_v59 = vadd.f32 %v607_v57, %v321_v53  ;;  %v802_v60 = vadd.f32 %v703_v58, %v353_v54  ;;  %v609_v61 = vpop.f32.mrb[15].mxu0  ;;  %v705_v62 = vpop.f32.mrb[15].mxu1  ;;  %v364_v52 = vld [vmem:[#allocation2 + $0x1c8] sm:$0xff] }
 0x223   : > { %v771_v63 = vadd.f32 %v609_v61, %v322_v55  ;;  %v803_v0 = vadd.f32 %v705_v62, %v354_v56  ;;  %v333_v61 = vld [vmem:[#allocation2 + $0xd0] sm:$0xff] }
 0x224   : > { %834 = vst [vmem:[#allocation2 + $0x70] sm:$0xff] %v770_v59  ;;  %866 = vst [vmem:[#allocation2 + $0x170] sm:$0xff] %v802_v60  ;;  %v365_v62 = vld [vmem:[#allocation2 + $0x1d0] sm:$0xff] }
 0x225   : > { %835 = vst [vmem:[#allocation2 + $0x78] sm:$0xff] %v771_v63  ;;  %867 = vst [vmem:[#allocation2 + $0x178] sm:$0xff] %v803_v0  ;;  %v613_v5 = vpop.f32.mrb[16].mxu0  ;;  %v709_v6 = vpop.f32.mrb[16].mxu1  ;;  %v334_v63 = vld [vmem:[#allocation2 + $0xd8] sm:$0xff] }
 0x226   : > { %v772_v7 = vadd.f32 %v613_v5, %v323_v1  ;;  %v804_v8 = vadd.f32 %v709_v6, %v355_v2  ;;  %v615_v9 = vpop.f32.mrb[17].mxu0  ;;  %v711_v10 = vpop.f32.mrb[17].mxu1  ;;  %v366_v0 = vld [vmem:[#allocation2 + $0x1d8] sm:$0xff] }
 0x227   : > { %v773_v11 = vadd.f32 %v615_v9, %v324_v3  ;;  %v805_v12 = vadd.f32 %v711_v10, %v356_v4  ;;  %v335_v9 = vld [vmem:[#allocation2 + $0xe0] sm:$0xff] }
 0x228   : > { %836 = vst [vmem:[#allocation2 + $0x80] sm:$0xff] %v772_v7  ;;  %868 = vst [vmem:[#allocation2 + $0x180] sm:$0xff] %v804_v8  ;;  %v367_v10 = vld [vmem:[#allocation2 + $0x1e0] sm:$0xff] }
 0x229   : > { %837 = vst [vmem:[#allocation2 + $0x88] sm:$0xff] %v773_v11  ;;  %869 = vst [vmem:[#allocation2 + $0x188] sm:$0xff] %v805_v12  ;;  %v619_v17 = vpop.f32.mrb[18].mxu0  ;;  %v715_v18 = vpop.f32.mrb[18].mxu1  ;;  %v336_v11 = vld [vmem:[#allocation2 + $0xe8] sm:$0xff] }
 0x22a   : > { %v774_v19 = vadd.f32 %v619_v17, %v325_v13  ;;  %v806_v20 = vadd.f32 %v715_v18, %v357_v14  ;;  %v621_v21 = vpop.f32.mrb[19].mxu0  ;;  %v717_v22 = vpop.f32.mrb[19].mxu1  ;;  %v368_v12 = vld [vmem:[#allocation2 + $0x1e8] sm:$0xff] }
 0x22b   : > { %v775_v23 = vadd.f32 %v621_v21, %v326_v15  ;;  %v807_v24 = vadd.f32 %v717_v22, %v358_v16  ;;  %v337_v21 = vld [vmem:[#allocation2 + $0xf0] sm:$0xff] }
 0x22c   : > { %838 = vst [vmem:[#allocation2 + $0x90] sm:$0xff] %v774_v19  ;;  %870 = vst [vmem:[#allocation2 + $0x190] sm:$0xff] %v806_v20  ;;  %v369_v22 = vld [vmem:[#allocation2 + $0x1f0] sm:$0xff] }
 0x22d   : > { %839 = vst [vmem:[#allocation2 + $0x98] sm:$0xff] %v775_v23  ;;  %871 = vst [vmem:[#allocation2 + $0x198] sm:$0xff] %v807_v24  ;;  %v625_v29 = vpop.f32.mrb[20].mxu0  ;;  %v721_v30 = vpop.f32.mrb[20].mxu1  ;;  %v338_v23 = vld [vmem:[#allocation2 + $0xf8] sm:$0xff] }
 0x22e   : > { %v776_v31 = vadd.f32 %v625_v29, %v327_v25  ;;  %v808_v32 = vadd.f32 %v721_v30, %v359_v26  ;;  %v627_v33 = vpop.f32.mrb[21].mxu0  ;;  %v723_v34 = vpop.f32.mrb[21].mxu1  ;;  %v370_v24 = vld [vmem:[#allocation2 + $0x1f8] sm:$0xff] }
 0x22f   : > { %v777_v35 = vadd.f32 %v627_v33, %v328_v27  ;;  %v809_v36 = vadd.f32 %v723_v34, %v360_v28  ;;  %v888_v33 = vld [vmem:[#allocation2] sm:$0xff] (!%p1174_p12)  ;;  %v889_v34 = vld [vmem:[#allocation2 + $0x8] sm:$0xff] (!%p1174_p12) }
 0x230   : > { %840 = vst [vmem:[#allocation2 + $0xa0] sm:$0xff] %v776_v31  ;;  %872 = vst [vmem:[#allocation2 + $0x1a0] sm:$0xff] %v808_v32 }
 0x231   : > { %841 = vst [vmem:[#allocation2 + $0xa8] sm:$0xff] %v777_v35  ;;  %873 = vst [vmem:[#allocation2 + $0x1a8] sm:$0xff] %v809_v36  ;;  %v631_v41 = vpop.f32.mrb[22].mxu0  ;;  %v727_v42 = vpop.f32.mrb[22].mxu1  ;;  %v890_v35 = vld [vmem:[#allocation2 + $0x10] sm:$0xff] (!%p1174_p12)  ;;  %v891_v36 = vld [vmem:[#allocation2 + $0x18] sm:$0xff] (!%p1174_p12) }
 0x232   : > { %v778_v43 = vadd.f32 %v631_v41, %v329_v37  ;;  %v810_v44 = vadd.f32 %v727_v42, %v361_v38  ;;  %v633_v45 = vpop.f32.mrb[23].mxu0  ;;  %v729_v46 = vpop.f32.mrb[23].mxu1  ;;  %952 = vst [vmem:[%s1996_s28] sm:$0xff] (!%p1174_p12), %v888_v33  ;;  %953 = vst [vmem:[%s1996_s28 + $0x8] sm:$0xff] (!%p1174_p12), %v889_v34  ;;  %v892_v37 = vld [vmem:[#allocation2 + $0x20] sm:$0xff] (!%p1174_p12)  ;;  %v893_v38 = vld [vmem:[#allocation2 + $0x28] sm:$0xff] (!%p1174_p12) }
 0x233   : > { %v779_v47 = vadd.f32 %v633_v45, %v330_v39  ;;  %v811_v48 = vadd.f32 %v729_v46, %v362_v40  ;;  %954 = vst [vmem:[%s1996_s28 + $0x10] sm:$0xff] (!%p1174_p12), %v890_v35  ;;  %955 = vst [vmem:[%s1996_s28 + $0x18] sm:$0xff] (!%p1174_p12), %v891_v36  ;;  %v894_v39 = vld [vmem:[#allocation2 + $0x30] sm:$0xff] (!%p1174_p12)  ;;  %v895_v40 = vld [vmem:[#allocation2 + $0x38] sm:$0xff] (!%p1174_p12) }
 0x234   : > { %842 = vst [vmem:[#allocation2 + $0xb0] sm:$0xff] %v778_v43  ;;  %874 = vst [vmem:[#allocation2 + $0x1b0] sm:$0xff] %v810_v44  ;;  %v896_v41 = vld [vmem:[#allocation2 + $0x40] sm:$0xff] (!%p1174_p12)  ;;  %v897_v42 = vld [vmem:[#allocation2 + $0x48] sm:$0xff] (!%p1174_p12) }
 0x235   : > { %843 = vst [vmem:[#allocation2 + $0xb8] sm:$0xff] %v779_v47  ;;  %875 = vst [vmem:[#allocation2 + $0x1b8] sm:$0xff] %v811_v48  ;;  %v637_v53 = vpop.f32.mrb[24].mxu0  ;;  %v733_v54 = vpop.f32.mrb[24].mxu1  ;;  %v898_v43 = vld [vmem:[#allocation2 + $0x50] sm:$0xff] (!%p1174_p12)  ;;  %v899_v44 = vld [vmem:[#allocation2 + $0x58] sm:$0xff] (!%p1174_p12) }
 0x236   : > { %v780_v55 = vadd.f32 %v637_v53, %v331_v49  ;;  %v812_v56 = vadd.f32 %v733_v54, %v363_v50  ;;  %v639_v57 = vpop.f32.mrb[25].mxu0  ;;  %v735_v58 = vpop.f32.mrb[25].mxu1  ;;  %956 = vst [vmem:[%s1996_s28 + $0x20] sm:$0xff] (!%p1174_p12), %v892_v37  ;;  %957 = vst [vmem:[%s1996_s28 + $0x28] sm:$0xff] (!%p1174_p12), %v893_v38  ;;  %v900_v45 = vld [vmem:[#allocation2 + $0x60] sm:$0xff] (!%p1174_p12)  ;;  %v901_v46 = vld [vmem:[#allocation2 + $0x68] sm:$0xff] (!%p1174_p12) }
 0x237   : > { %v781_v59 = vadd.f32 %v639_v57, %v332_v51  ;;  %v813_v60 = vadd.f32 %v735_v58, %v364_v52  ;;  %958 = vst [vmem:[%s1996_s28 + $0x30] sm:$0xff] (!%p1174_p12), %v894_v39  ;;  %959 = vst [vmem:[%s1996_s28 + $0x38] sm:$0xff] (!%p1174_p12), %v895_v40  ;;  %v902_v47 = vld [vmem:[#allocation2 + $0x70] sm:$0xff] (!%p1174_p12)  ;;  %v903_v48 = vld [vmem:[#allocation2 + $0x78] sm:$0xff] (!%p1174_p12) }
 0x238   : > { %844 = vst [vmem:[#allocation2 + $0xc0] sm:$0xff] %v780_v55  ;;  %876 = vst [vmem:[#allocation2 + $0x1c0] sm:$0xff] %v812_v56  ;;  %v904_v49 = vld [vmem:[#allocation2 + $0x80] sm:$0xff] (!%p1174_p12)  ;;  %v905_v50 = vld [vmem:[#allocation2 + $0x88] sm:$0xff] (!%p1174_p12) }
 0x239   : > { %845 = vst [vmem:[#allocation2 + $0xc8] sm:$0xff] %v781_v59  ;;  %877 = vst [vmem:[#allocation2 + $0x1c8] sm:$0xff] %v813_v60  ;;  %v643_v1 = vpop.f32.mrb[26].mxu0  ;;  %v739_v2 = vpop.f32.mrb[26].mxu1  ;;  %v906_v51 = vld [vmem:[#allocation2 + $0x90] sm:$0xff] (!%p1174_p12)  ;;  %v907_v52 = vld [vmem:[#allocation2 + $0x98] sm:$0xff] (!%p1174_p12) }
 0x23a   : > { %v782_v3 = vadd.f32 %v643_v1, %v333_v61  ;;  %v814_v4 = vadd.f32 %v739_v2, %v365_v62  ;;  %v645_v5 = vpop.f32.mrb[27].mxu0  ;;  %v741_v6 = vpop.f32.mrb[27].mxu1  ;;  %960 = vst [vmem:[%s1996_s28 + $0x40] sm:$0xff] (!%p1174_p12), %v896_v41  ;;  %961 = vst [vmem:[%s1996_s28 + $0x48] sm:$0xff] (!%p1174_p12), %v897_v42  ;;  %v908_v53 = vld [vmem:[#allocation2 + $0xa0] sm:$0xff] (!%p1174_p12)  ;;  %v909_v54 = vld [vmem:[#allocation2 + $0xa8] sm:$0xff] (!%p1174_p12) }
 0x23b   : > { %v783_v7 = vadd.f32 %v645_v5, %v334_v63  ;;  %v815_v8 = vadd.f32 %v741_v6, %v366_v0  ;;  %962 = vst [vmem:[%s1996_s28 + $0x50] sm:$0xff] (!%p1174_p12), %v898_v43  ;;  %963 = vst [vmem:[%s1996_s28 + $0x58] sm:$0xff] (!%p1174_p12), %v899_v44  ;;  %v910_v55 = vld [vmem:[#allocation2 + $0xb0] sm:$0xff] (!%p1174_p12)  ;;  %v920_v1 = vld [vmem:[#allocation2 + $0x100] sm:$0xff] (!%p1174_p12) }
 0x23c   : > { %846 = vst [vmem:[#allocation2 + $0xd0] sm:$0xff] %v782_v3  ;;  %878 = vst [vmem:[#allocation2 + $0x1d0] sm:$0xff] %v814_v4  ;;  %v911_v56 = vld [vmem:[#allocation2 + $0xb8] sm:$0xff] (!%p1174_p12)  ;;  %v921_v2 = vld [vmem:[#allocation2 + $0x108] sm:$0xff] (!%p1174_p12) }
 0x23d   : > { %847 = vst [vmem:[#allocation2 + $0xd8] sm:$0xff] %v783_v7  ;;  %879 = vst [vmem:[#allocation2 + $0x1d8] sm:$0xff] %v815_v8  ;;  %v649_v13 = vpop.f32.mrb[28].mxu0  ;;  %v745_v14 = vpop.f32.mrb[28].mxu1  ;;  %v922_v3 = vld [vmem:[#allocation2 + $0x110] sm:$0xff] (!%p1174_p12)  ;;  %v923_v4 = vld [vmem:[#allocation2 + $0x118] sm:$0xff] (!%p1174_p12) }
 0x23e   : > { %v784_v15 = vadd.f32 %v649_v13, %v335_v9  ;;  %v816_v16 = vadd.f32 %v745_v14, %v367_v10  ;;  %v651_v17 = vpop.f32.mrb[29].mxu0  ;;  %v747_v18 = vpop.f32.mrb[29].mxu1  ;;  %964 = vst [vmem:[%s1996_s28 + $0x60] sm:$0xff] (!%p1174_p12), %v900_v45  ;;  %965 = vst [vmem:[%s1996_s28 + $0x68] sm:$0xff] (!%p1174_p12), %v901_v46  ;;  %v924_v5 = vld [vmem:[#allocation2 + $0x120] sm:$0xff] (!%p1174_p12)  ;;  %v925_v6 = vld [vmem:[#allocation2 + $0x128] sm:$0xff] (!%p1174_p12) }
 0x23f   : > { %v785_v19 = vadd.f32 %v651_v17, %v336_v11  ;;  %v817_v20 = vadd.f32 %v747_v18, %v368_v12  ;;  %887 = sbr.rel (%p1174_p12) target bundleno = 604 (0x25c), region = 44  ;;  %966 = vst [vmem:[%s1996_s28 + $0x70] sm:$0xff] (!%p1174_p12), %v902_v47  ;;  %967 = vst [vmem:[%s1996_s28 + $0x78] sm:$0xff] (!%p1174_p12), %v903_v48  ;;  %v912_v57 = vld [vmem:[#allocation2 + $0xc0] sm:$0xff] (!%p1174_p12)  ;;  %v926_v7 = vld [vmem:[#allocation2 + $0x130] sm:$0xff] (!%p1174_p12) }
 0x240   : > { %848 = vst [vmem:[#allocation2 + $0xe0] sm:$0xff] %v784_v15  ;;  %880 = vst [vmem:[#allocation2 + $0x1e0] sm:$0xff] %v816_v16  ;;  %v913_v58 = vld [vmem:[#allocation2 + $0xc8] sm:$0xff] (!%p1174_p12)  ;;  %v927_v8 = vld [vmem:[#allocation2 + $0x138] sm:$0xff] (!%p1174_p12) }
 0x241   : > { %849 = vst [vmem:[#allocation2 + $0xe8] sm:$0xff] %v785_v19  ;;  %881 = vst [vmem:[#allocation2 + $0x1e8] sm:$0xff] %v817_v20  ;;  %v655_v25 = vpop.f32.mrb[30].mxu0  ;;  %v751_v26 = vpop.f32.mrb[30].mxu1  ;;  %v928_v9 = vld [vmem:[#allocation2 + $0x140] sm:$0xff] (!%p1174_p12)  ;;  %v929_v10 = vld [vmem:[#allocation2 + $0x148] sm:$0xff] (!%p1174_p12) }
 0x242   : > { %v786_v27 = vadd.f32 %v655_v25, %v337_v21  ;;  %v818_v28 = vadd.f32 %v751_v26, %v369_v22  ;;  %v657_v29 = vpop.f32.mrb[31].mxu0  ;;  %v753_v30 = vpop.f32.mrb[31].mxu1  ;;  %968 = vst [vmem:[%s1996_s28 + $0x80] sm:$0xff] (!%p1174_p12), %v904_v49  ;;  %969 = vst [vmem:[%s1996_s28 + $0x88] sm:$0xff] (!%p1174_p12), %v905_v50  ;;  %v930_v11 = vld [vmem:[#allocation2 + $0x150] sm:$0xff] (!%p1174_p12)  ;;  %v931_v12 = vld [vmem:[#allocation2 + $0x158] sm:$0xff] (!%p1174_p12) }
 0x243   : > { %v787_v31 = vadd.f32 %v657_v29, %v338_v23  ;;  %v819_v32 = vadd.f32 %v753_v30, %v370_v24  ;;  %970 = vst [vmem:[%s1996_s28 + $0x90] sm:$0xff] (!%p1174_p12), %v906_v51  ;;  %971 = vst [vmem:[%s1996_s28 + $0x98] sm:$0xff] (!%p1174_p12), %v907_v52  ;;  %v914_v59 = vld [vmem:[#allocation2 + $0xd0] sm:$0xff] (!%p1174_p12)  ;;  %v932_v13 = vld [vmem:[#allocation2 + $0x160] sm:$0xff] (!%p1174_p12) }
 0x244   : > { %850 = vst [vmem:[#allocation2 + $0xf0] sm:$0xff] %v786_v27  ;;  %882 = vst [vmem:[#allocation2 + $0x1f0] sm:$0xff] %v818_v28  ;;  %v915_v60 = vld [vmem:[#allocation2 + $0xd8] sm:$0xff] (!%p1174_p12)  ;;  %v933_v14 = vld [vmem:[#allocation2 + $0x168] sm:$0xff] (!%p1174_p12) }
 0x245   : > { %851 = vst [vmem:[#allocation2 + $0xf8] sm:$0xff] %v787_v31  ;;  %883 = vst [vmem:[#allocation2 + $0x1f8] sm:$0xff] %v819_v32  ;;  %v934_v15 = vld [vmem:[#allocation2 + $0x170] sm:$0xff] (!%p1174_p12)  ;;  %v935_v16 = vld [vmem:[#allocation2 + $0x178] sm:$0xff] (!%p1174_p12) }
 0x246   : > { %972 = vst [vmem:[%s1996_s28 + $0xa0] sm:$0xff] %v908_v53  ;;  %973 = vst [vmem:[%s1996_s28 + $0xa8] sm:$0xff] %v909_v54  ;;  %v936_v17 = vld [vmem:[#allocation2 + $0x180] sm:$0xff]  ;;  %v937_v18 = vld [vmem:[#allocation2 + $0x188] sm:$0xff] }
 0x247   : > { %974 = vst [vmem:[%s1996_s28 + $0xb0] sm:$0xff] %v910_v55  ;;  %975 = vst [vmem:[%s1996_s28 + $0xb8] sm:$0xff] %v911_v56  ;;  %v916_v61 = vld [vmem:[#allocation2 + $0xe0] sm:$0xff]  ;;  %v938_v19 = vld [vmem:[#allocation2 + $0x190] sm:$0xff] }
 0x248   : > { %976 = vst [vmem:[%s1996_s28 + $0xc0] sm:$0xff] %v912_v57  ;;  %977 = vst [vmem:[%s1996_s28 + $0xc8] sm:$0xff] %v913_v58  ;;  %v917_v62 = vld [vmem:[#allocation2 + $0xe8] sm:$0xff]  ;;  %v939_v20 = vld [vmem:[#allocation2 + $0x198] sm:$0xff] }
 0x249   : > { %978 = vst [vmem:[%s1996_s28 + $0xd0] sm:$0xff] %v914_v59  ;;  %979 = vst [vmem:[%s1996_s28 + $0xd8] sm:$0xff] %v915_v60  ;;  %v940_v21 = vld [vmem:[#allocation2 + $0x1a0] sm:$0xff]  ;;  %v941_v22 = vld [vmem:[#allocation2 + $0x1a8] sm:$0xff] }
 0x24a   : > { %980 = vst [vmem:[%s1996_s28 + $0xe0] sm:$0xff] %v916_v61  ;;  %981 = vst [vmem:[%s1996_s28 + $0xe8] sm:$0xff] %v917_v62  ;;  %v942_v23 = vld [vmem:[#allocation2 + $0x1b0] sm:$0xff]  ;;  %v943_v24 = vld [vmem:[#allocation2 + $0x1b8] sm:$0xff] }
 0x24b   : > { %v918_v63 = vld [vmem:[#allocation2 + $0xf0] sm:$0xff]  ;;  %984 = vst [vmem:[%s1996_s28 + $0x100] sm:$0xff] %v920_v1  ;;  %985 = vst [vmem:[%s1996_s28 + $0x108] sm:$0xff] %v921_v2  ;;  %v944_v25 = vld [vmem:[#allocation2 + $0x1c0] sm:$0xff] }
 0x24c   : > { %v919_v0 = vld [vmem:[#allocation2 + $0xf8] sm:$0xff]  ;;  %982 = vst [vmem:[%s1996_s28 + $0xf0] sm:$0xff] %v918_v63  ;;  %986 = vst [vmem:[%s1996_s28 + $0x110] sm:$0xff] %v922_v3  ;;  %v945_v26 = vld [vmem:[#allocation2 + $0x1c8] sm:$0xff] }
 0x24d   : > { %983 = vst [vmem:[%s1996_s28 + $0xf8] sm:$0xff] %v919_v0  ;;  %987 = vst [vmem:[%s1996_s28 + $0x118] sm:$0xff] %v923_v4  ;;  %v946_v27 = vld [vmem:[#allocation2 + $0x1d0] sm:$0xff]  ;;  %v947_v28 = vld [vmem:[#allocation2 + $0x1d8] sm:$0xff] }
 0x24e   : > { %988 = vst [vmem:[%s1996_s28 + $0x120] sm:$0xff] %v924_v5  ;;  %989 = vst [vmem:[%s1996_s28 + $0x128] sm:$0xff] %v925_v6  ;;  %v948_v29 = vld [vmem:[#allocation2 + $0x1e0] sm:$0xff]  ;;  %v949_v30 = vld [vmem:[#allocation2 + $0x1e8] sm:$0xff] }
 0x24f   : > { %990 = vst [vmem:[%s1996_s28 + $0x130] sm:$0xff] %v926_v7  ;;  %991 = vst [vmem:[%s1996_s28 + $0x138] sm:$0xff] %v927_v8  ;;  %v950_v31 = vld [vmem:[#allocation2 + $0x1f0] sm:$0xff]  ;;  %v951_v32 = vld [vmem:[#allocation2 + $0x1f8] sm:$0xff] }
 0x250   : > { %992 = vst [vmem:[%s1996_s28 + $0x140] sm:$0xff] %v928_v9  ;;  %993 = vst [vmem:[%s1996_s28 + $0x148] sm:$0xff] %v929_v10 }
 0x251   : > { %994 = vst [vmem:[%s1996_s28 + $0x150] sm:$0xff] %v930_v11  ;;  %995 = vst [vmem:[%s1996_s28 + $0x158] sm:$0xff] %v931_v12 }
 0x252   : > { %996 = vst [vmem:[%s1996_s28 + $0x160] sm:$0xff] %v932_v13  ;;  %997 = vst [vmem:[%s1996_s28 + $0x168] sm:$0xff] %v933_v14 }
 0x253   : > { %998 = vst [vmem:[%s1996_s28 + $0x170] sm:$0xff] %v934_v15  ;;  %999 = vst [vmem:[%s1996_s28 + $0x178] sm:$0xff] %v935_v16 }
 0x254   : > { %1000 = vst [vmem:[%s1996_s28 + $0x180] sm:$0xff] %v936_v17  ;;  %1001 = vst [vmem:[%s1996_s28 + $0x188] sm:$0xff] %v937_v18 }
 0x255   : > { %1002 = vst [vmem:[%s1996_s28 + $0x190] sm:$0xff] %v938_v19  ;;  %1003 = vst [vmem:[%s1996_s28 + $0x198] sm:$0xff] %v939_v20 }
 0x256   : > { %1004 = vst [vmem:[%s1996_s28 + $0x1a0] sm:$0xff] %v940_v21  ;;  %1005 = vst [vmem:[%s1996_s28 + $0x1a8] sm:$0xff] %v941_v22 }
 0x257   : > { %1006 = vst [vmem:[%s1996_s28 + $0x1b0] sm:$0xff] %v942_v23  ;;  %1007 = vst [vmem:[%s1996_s28 + $0x1b8] sm:$0xff] %v943_v24 }
 0x258   : > { %1008 = vst [vmem:[%s1996_s28 + $0x1c0] sm:$0xff] %v944_v25  ;;  %1009 = vst [vmem:[%s1996_s28 + $0x1c8] sm:$0xff] %v945_v26 }
 0x259   : > { %1010 = vst [vmem:[%s1996_s28 + $0x1d0] sm:$0xff] %v946_v27  ;;  %1011 = vst [vmem:[%s1996_s28 + $0x1d8] sm:$0xff] %v947_v28 }
 0x25a   : > { %1012 = vst [vmem:[%s1996_s28 + $0x1e0] sm:$0xff] %v948_v29  ;;  %1013 = vst [vmem:[%s1996_s28 + $0x1e8] sm:$0xff] %v949_v30 }
 0x25b   : > { %1014 = vst [vmem:[%s1996_s28 + $0x1f0] sm:$0xff] %v950_v31  ;;  %1015 = vst [vmem:[%s1996_s28 + $0x1f8] sm:$0xff] %v951_v32 }
 0x25c PF: > { %s2411_s30 = sld [smem:[#allocation13_spill]]  ;;  %s2412_s27 = sld [smem:[#allocation14_spill]] }
 0x25d   : > { %s1033_s5 = sshll.u32 %s1996_s28, 4  ;;  %s2413_s12 = sld [smem:[#allocation22_spill]]  ;;  %s2259_s5 = int_to_ptr.vmem [resolvable:$true] %s1033_s5 }
 0x25e   : > { %s2268_s18 = scalar_lea.sflag [#allocation5], %s230_s8  ;;  %s1495_s1 = scalar_lea.vmem %s2259_s5, 8192 }
 0x25f   : > { %p1496_p13 = scmp.ne.s32.totalorder %s2259_s5, %s1495_s1  ;;  %p2415_p5 = scmp.ne.s32.totalorder %s2396_s2, 0 }
 0x260   : > { %s1669_s28 = smov [#allocation8]  }
 0x261   : > { %p1497_p6 = pnand %p1496_p13, %p2415_p5 }
 0x262   : > { %s1177_s29 = sshll.u32 %s2411_s30, 1  ;;  %s1184_s4 = sshll.u32 %s2412_s27, 8 }
 0x263   : > { %s1030_s7 = sadd.s32 %s1184_s4, %s1177_s29  ;;  %s2414_s25 = smov %s2413_s12 }
 0x264   : > { %s1179_s6 = sshll.u32 %s1030_s7, 7  ;;  %p1498_p9 = pneg %p1497_p6 }
 0x265   : > { %s2264_s26 = scalar_lea.hbm %s2413_s12, %s1179_s6  ;;  %s1499_s30 = sshll.u32 %s1669_s28, 4  ;;  %s1500_s30 = int_to_ptr.vmem [resolvable:$false] %s1499_s30 }
 0x266   : > { %s1501_s27 = scalar_lea.vmem %s1500_s30, 16384  ;;  %p1502_p0 = scmp.lt.s32.totalorder %s2259_s5, %s1500_s30 }
 0x267   : > { %p1503_p3 = scmp.lt.s32.totalorder %s1501_s27, %s1495_s1 }
 0x269   : > { %p1504_p2 = por %p1503_p3, %p1502_p0 }
 0x26b   : > { %p1505_p1 = pnand %p1504_p2, %p1498_p9 }
 0x26d   : > { %1508 = shalt.err (!%p1505_p1)
}
 0x26e   : > { %s1509_s8 = scalar_lea.hbm %s2264_s26, 8192  ;;  %s1513_s7 = scalar_lea.hbm %s2414_s25, 65536 }
 0x26f   : > { %p1510_p8 = scmp.ne.s32.totalorder %s2264_s26, %s1509_s8  ;;  %p1514_p7 = scmp.lt.u32.totalorder %s2264_s26, %s2414_s25 }
 0x270   : > { %p1515_p4 = scmp.lt.u32.totalorder %s1513_s7, %s1509_s8  ;;  %p1517_p13 = scmp.lt.u32.totalorder %s1509_s8, %s2264_s26 }
 0x271   : > { %p1511_p10 = pnand %p1510_p8, %p2415_p5 }
 0x272   : > { %p1516_p12 = por %p1515_p4, %p1514_p7 }
 0x273   : > { %p1512_p11 = pneg %p1511_p10 }
 0x274   : > { %p1518_p6 = por %p1517_p13, %p1516_p12 }
 0x276   : > { %p1519_p9 = pnand %p1518_p6, %p1512_p11 }
 0x278   : > { %1522 = shalt.err (!%p1519_p9)
}
 0x279   : > { %s1670_s1 = smov 256   ;;  %s1671_s3 = smov 1024  }
 0x27a   : > { %s1672_s12 = smov 16  }
 0x27b   : > { %1285 = dma.vmem_to_hbm [thread:$0]  (%p2415_p5), %s2259_s5, 8192, %s2264_s26, %s2268_s18, %s1670_s1, %s1671_s3, %s1672_s12  }
 0x27c PF: > { %p1299_p0 = scmp.ge.s32.totalorder %s1661_s24, 2  ;;  %s1048_s28 = sand.u32 1, %s1601_s9  }
 0x27d   : > { %p2416_p3 = scmp.ne.s32.totalorder %s2398_s20, 0  ;;  %s1049_s30 = scalar_lea.sflag [#allocation5], %s1048_s28 }
 0x27f   : > { %p1295_p2 = pnand %p1299_p0, %p2416_p3 }
 0x281   : > { %1596 = dma.done.wait (!%p1295_p2), %s1049_s30, 8192  }
 0x282   : > { %1598 = vsyncadd (!%p1295_p2), %s1049_s30, 4294959104  ;;  %s21_s24 = sadd.s32 1, %s1661_s24   ;;  %s2418_s2 = smov %s1918_s15 }
 0x283   : > { %p2297_p1 = scmp.ge.s32.totalorder %s21_s24, 18   ;;  %s2419_s20 = sld [smem:[#allocation15_spill]] }
 0x284   : > { %s2420_s5 = sld [smem:[#allocation16_spill]]  ;;  %s2421_s26 = sld [smem:[#allocation18_spill]] }
 0x285   : > { %s2422_s23 = sld [smem:[#allocation19_spill]]  ;;  %s2423_s9 = smov %s1605_s10 }
 0x286   : > { %s2424_s10 = smov %s1609_s11  ;;  %s2425_s11 = smov %s1921_s0 }
 0x287   : > { %s2426_s12 = smov %s1617_s13  ;;  %s2427_s13 = smov %s1621_s14 }
 0x288   : > { %s2428_s14 = smov %s1902_s19  ;;  %s2429_s15 = smov %s1629_s16 }
 0x289   : > { %s2430_s16 = smov %s1633_s17  ;;  %s2431_s17 = smov %s2418_s2 }
 0x28a   : > { %s2432_s18 = smov %s1649_s21  ;;  %s2433_s19 = smov %s1653_s22 }
 0x28b   : > { %s2434_s21 = smov %s2420_s5  ;;  %s2435_s22 = smov %s2421_s26 }
 0x28c   :  { %20 = sbr.rel (!%p2297_p1) target bundleno = 17 (0x11), region = 94 }
 0x293   :  { %1054 = vsyncpa [#allocation4], 1 }
 0x294   :  { %1056 = vsyncpa [#allocation4 + $0x1], 1 }
 0x295   :  { %1057 = vsyncpa [#allocation7], 1 }
 0x296   :  { %1059 = vsyncpa [#allocation7 + $0x1], 1 }
 0x297   :  { %1060 = vsyncpa [#allocation5], 1 }
 0x298   :  { %1062 = vsyncpa [#allocation5 + $0x1], 1 }

</bundles_post_ra>
